<compile_context>
chip_gen: v7x
topology: tpu7x:2x2x1
jax: 0.10.0
libtpu: 0.0.40
codegen_flags: <defaults>
</compile_context>

<pallas_src>
import jax
import jax.numpy as jnp
from jax import lax
from jax.experimental import pallas as pl
from jax.experimental.pallas import tpu as pltpu


def patch_select_kernel(q_ref, k_ref, g_ref, idx_ref, rel_ref):
    # q_ref  : (1, Hq*Wq, Pw*C) f32 query; row r = i*Wq + j, channel vector
    #          of position (i, j) tiled Pw times along lanes.
    # k_ref  : (1, Hk, Wk*C)    f32 key, lane index = w*C + c.
    # g_ref  : (Pw*C, Pw)       f32 group-sum matrix, entries = 1/(C*Hq*Wq).
    # idx_ref: (1, 1, 1) int32  flat argmin (ph*Pw + pw)  -- Unfold ordering.
    # rel_ref: (1, 1, 1) f32    min of the mean-abs-diff map.
    _, HqWq, PwC = q_ref.shape
    _, Hk, WkC = k_ref.shape
    Pw = g_ref.shape[1]
    C = PwC // Pw
    Wq = WkC // C - Pw + 1
    Hq = HqWq // Wq
    Ph = Hk - Hq + 1

    q = q_ref[0]                                     # (Hq*Wq, Pw*C), loaded once

    # acc[ph, pw*C + c] = sum_{i,j} |key[c, ph+i, pw+j] - query[c, i, j]|
    acc = jnp.zeros((Ph, PwC), jnp.float32)
    for i in range(Hq):
        for j in range(Wq):
            win = k_ref[0, i:i + Ph, j * C:j * C + PwC]          # (Ph, Pw*C)
            r = i * Wq + j
            acc = acc + jnp.abs(win - q[r:r + 1, :])

    # Channel group-sum + mean scale in one small MXU matmul -> (Ph, Pw).
    y = jnp.dot(acc, g_ref[...], preferred_element_type=jnp.float32)

    # Fused min / first-argmin over the (ph, pw) relevance map.
    m = jnp.min(jnp.min(y, axis=1, keepdims=True), axis=0, keepdims=True)  # (1,1)
    ph_i = lax.broadcasted_iota(jnp.int32, (Ph, Pw), 0)
    pw_i = lax.broadcasted_iota(jnp.int32, (Ph, Pw), 1)
    flat = (ph_i * Pw + pw_i).astype(jnp.float32)
    cand = jnp.where(y == m, flat, jnp.float32(Ph * Pw))
    idxf = jnp.min(jnp.min(cand, axis=1, keepdims=True), axis=0, keepdims=True)

    idx_ref[0] = idxf.astype(jnp.int32)
    rel_ref[0] = m


def patch_select_pallas(query, key, stride=1):
    """query: (B, C, Hq, Wq); key: (B, C, Hk, Wk) ->
    (hard_indices (B,) int32, P, relavance_maps (B, 1) f32)."""
    assert stride == 1, "only stride=1 (the module default) is implemented"
    # TODO(synk): stride > 1 (strided patch grid) is not implemented.
    B, C, Hq, Wq = query.shape
    Bk, Ck, Hk, Wk = key.shape
    assert B == Bk and C == Ck and Hk >= Hq and Wk >= Wq

    P = Wk - Wq + 1
    Ph = Hk - Hq + 1
    Pw = Wk - Wq + 1
    PwC = Pw * C

    # Lane-dense layouts (one-time relayout of tiny tensors done in XLA):
    k_nhwc = jnp.transpose(key, (0, 2, 3, 1)).astype(jnp.float32)
    k2 = k_nhwc.reshape(B, Hk, Wk * C)                               # (B, Hk, Wk*C)
    q_nhwc = jnp.transpose(query, (0, 2, 3, 1)).astype(jnp.float32)
    q2 = jnp.broadcast_to(
        q_nhwc[:, :, :, None, :], (B, Hq, Wq, Pw, C)).reshape(B, Hq * Wq, PwC)

    # Group-sum matrix: sums the C channel lanes of each patch column and
    # applies the 1/(C*Hq*Wq) mean in the same matmul.
    inv_n = 1.0 / float(C * Hq * Wq)
    G = jnp.repeat(jnp.eye(Pw, dtype=jnp.float32), C, axis=0) * inv_n  # (Pw*C, Pw)

    idx3, rel3 = pl.pallas_call(
        patch_select_kernel,
        out_shape=(jax.ShapeDtypeStruct((B, 1, 1), jnp.int32),
                   jax.ShapeDtypeStruct((B, 1, 1), jnp.float32)),
        grid_spec=pltpu.PrefetchScalarGridSpec(
            num_scalar_prefetch=0,
            grid=(B,),
            in_specs=[
                pl.BlockSpec((1, Hq * Wq, PwC), lambda b: (b, 0, 0)),
                pl.BlockSpec((1, Hk, Wk * C), lambda b: (b, 0, 0)),
                pl.BlockSpec((PwC, Pw), lambda b: (0, 0)),
            ],
            out_specs=(
                pl.BlockSpec((1, 1, 1), lambda b: (b, 0, 0)),
                pl.BlockSpec((1, 1, 1), lambda b: (b, 0, 0)),
            ),
        ),
        compiler_params=pltpu.CompilerParams(
            dimension_semantics=("parallel",)),
    )(q2, k2, G)

    hard_indices = idx3.reshape(-1)        # (B,) int32 (PyTorch returns int64)
    relavance_maps = rel3.reshape(B, 1)
    return hard_indices, P, relavance_maps


def patch_select_reference(query, key, stride=1):
    """Pure-JAX reference mirroring the PyTorch forward (Unfold ordering)."""
    B, C, Hq, Wq = query.shape
    _, _, Hk, Wk = key.shape
    P = Wk - Wq + 1
    Ph = (Hk - Hq) // stride + 1
    Pw = (Wk - Wq) // stride + 1
    cols = []
    for ph in range(Ph):
        for pw in range(Pw):
            win = key[:, :, ph * stride:ph * stride + Hq,
                      pw * stride:pw * stride + Wq]
            cols.append(jnp.mean(jnp.abs(win - query), axis=(1, 2, 3)))
    y = jnp.stack(cols, axis=1)                     # (B, Ph*Pw), row-major (ph, pw)
    rel = jnp.min(y, axis=1, keepdims=True)
    idx = jnp.argmin(y, axis=1).astype(jnp.int32)
    return idx, P, rel


if __name__ == "__main__":
    B, C, Hq, Wq = 2, 4, 8, 8
    Hk, Wk = 16, 16
    rng = jax.random.PRNGKey(0)
    kq, kk = jax.random.split(rng)
    query = jax.random.normal(kq, (B, C, Hq, Wq), dtype=jnp.float32)
    key = jax.random.normal(kk, (B, C, Hk, Wk), dtype=jnp.float32)

    idx, P, rel = patch_select_pallas(query, key)
    idx, rel = jax.block_until_ready((idx, rel))

    ridx, rP, rrel = patch_select_reference(query, key)
    assert P == rP == Wk - Wq + 1
    assert idx.shape == (B,) and rel.shape == (B, 1)
    assert bool(jnp.all(idx == ridx.astype(idx.dtype)))
    assert float(jnp.max(jnp.abs(rel - rrel))) < 1e-4

    print("KERNEL_OK")
</pallas_src>

<mosaic_0001>
module attributes {stable_mosaic.version = 11 : i64} {
  func.func @patch_select_kernel(%arg0: i32, %arg1: memref<1x64x36xf32, #tpu.memory_space<vmem>>, %arg2: memref<1x16x64xf32, #tpu.memory_space<vmem>>, %arg3: memref<36x9xf32, #tpu.memory_space<vmem>>, %arg4: memref<1x1x1xi32, #tpu.memory_space<vmem>>, %arg5: memref<1x1x1xf32, #tpu.memory_space<vmem>>) attributes {dimension_semantics = [#tpu.dimension_semantics<parallel>], iteration_bounds = array<i64: 2>, scalar_prefetch = 0 : i64, scratch_operands = 0 : i64, tpu.core_type = #tpu.core_type<tc>, window_params = [{transform_indices = @transform_0, window_bounds = array<i64: 1, 64, 36>}, {transform_indices = @transform_1, window_bounds = array<i64: 1, 16, 64>}, {pipeline_mode = #tpu.pipeline_mode<synchronous>, transform_indices = @transform_2, window_bounds = array<i64: 36, 9>}, {transform_indices = @transform_3, window_bounds = array<i64: 1, 1, 1>}, {transform_indices = @transform_4, window_bounds = array<i64: 1, 1, 1>}]} {
    %c0 = arith.constant 0 : index
    %c0_0 = arith.constant 0 : index
    %c0_1 = arith.constant 0 : index
    %0 = vector.load %arg1[%c0, %c0_0, %c0_1] : memref<1x64x36xf32, #tpu.memory_space<vmem>>, vector<1x64x36xf32>
    %1 = vector.shape_cast %0 : vector<1x64x36xf32> to vector<64x36xf32>
    %cst = arith.constant 0.000000e+00 : f32
    %2 = vector.broadcast %cst : f32 to vector<9x36xf32>
    %c0_2 = arith.constant 0 : index
    %c0_3 = arith.constant 0 : index
    %c0_4 = arith.constant 0 : index
    %3 = vector.load %arg2[%c0_2, %c0_3, %c0_4] : memref<1x16x64xf32, #tpu.memory_space<vmem>>, vector<1x9x36xf32>
    %4 = vector.shape_cast %3 : vector<1x9x36xf32> to vector<9x36xf32>
    %5 = vector.extract_strided_slice %1 {offsets = [0, 0], sizes = [1, 36], strides = [1, 1]} : vector<64x36xf32> to vector<1x36xf32>
    %6 = vector.broadcast %5 : vector<1x36xf32> to vector<9x36xf32>
    %7 = arith.subf %4, %6 : vector<9x36xf32>
    %8 = math.absf %7 : vector<9x36xf32>
    %9 = arith.addf %2, %8 : vector<9x36xf32>
    %c0_5 = arith.constant 0 : index
    %c0_6 = arith.constant 0 : index
    %c4 = arith.constant 4 : index
    %10 = vector.load %arg2[%c0_5, %c0_6, %c4] : memref<1x16x64xf32, #tpu.memory_space<vmem>>, vector<1x9x36xf32>
    %11 = vector.shape_cast %10 : vector<1x9x36xf32> to vector<9x36xf32>
    %12 = vector.extract_strided_slice %1 {offsets = [1, 0], sizes = [1, 36], strides = [1, 1]} : vector<64x36xf32> to vector<1x36xf32>
    %13 = vector.broadcast %12 : vector<1x36xf32> to vector<9x36xf32>
    %14 = arith.subf %11, %13 : vector<9x36xf32>
    %15 = math.absf %14 : vector<9x36xf32>
    %16 = arith.addf %9, %15 : vector<9x36xf32>
    %c0_7 = arith.constant 0 : index
    %c0_8 = arith.constant 0 : index
    %c8 = arith.constant 8 : index
    %17 = vector.load %arg2[%c0_7, %c0_8, %c8] : memref<1x16x64xf32, #tpu.memory_space<vmem>>, vector<1x9x36xf32>
    %18 = vector.shape_cast %17 : vector<1x9x36xf32> to vector<9x36xf32>
    %19 = vector.extract_strided_slice %1 {offsets = [2, 0], sizes = [1, 36], strides = [1, 1]} : vector<64x36xf32> to vector<1x36xf32>
    %20 = vector.broadcast %19 : vector<1x36xf32> to vector<9x36xf32>
    %21 = arith.subf %18, %20 : vector<9x36xf32>
    %22 = math.absf %21 : vector<9x36xf32>
    %23 = arith.addf %16, %22 : vector<9x36xf32>
    %c0_9 = arith.constant 0 : index
    %c0_10 = arith.constant 0 : index
    %c12 = arith.constant 12 : index
    %24 = vector.load %arg2[%c0_9, %c0_10, %c12] : memref<1x16x64xf32, #tpu.memory_space<vmem>>, vector<1x9x36xf32>
    %25 = vector.shape_cast %24 : vector<1x9x36xf32> to vector<9x36xf32>
    %26 = vector.extract_strided_slice %1 {offsets = [3, 0], sizes = [1, 36], strides = [1, 1]} : vector<64x36xf32> to vector<1x36xf32>
    %27 = vector.broadcast %26 : vector<1x36xf32> to vector<9x36xf32>
    %28 = arith.subf %25, %27 : vector<9x36xf32>
    %29 = math.absf %28 : vector<9x36xf32>
    %30 = arith.addf %23, %29 : vector<9x36xf32>
    %c0_11 = arith.constant 0 : index
    %c0_12 = arith.constant 0 : index
    %c16 = arith.constant 16 : index
    %31 = vector.load %arg2[%c0_11, %c0_12, %c16] : memref<1x16x64xf32, #tpu.memory_space<vmem>>, vector<1x9x36xf32>
    %32 = vector.shape_cast %31 : vector<1x9x36xf32> to vector<9x36xf32>
    %33 = vector.extract_strided_slice %1 {offsets = [4, 0], sizes = [1, 36], strides = [1, 1]} : vector<64x36xf32> to vector<1x36xf32>
    %34 = vector.broadcast %33 : vector<1x36xf32> to vector<9x36xf32>
    %35 = arith.subf %32, %34 : vector<9x36xf32>
    %36 = math.absf %35 : vector<9x36xf32>
    %37 = arith.addf %30, %36 : vector<9x36xf32>
    %c0_13 = arith.constant 0 : index
    %c0_14 = arith.constant 0 : index
    %c20 = arith.constant 20 : index
    %38 = vector.load %arg2[%c0_13, %c0_14, %c20] : memref<1x16x64xf32, #tpu.memory_space<vmem>>, vector<1x9x36xf32>
    %39 = vector.shape_cast %38 : vector<1x9x36xf32> to vector<9x36xf32>
    %40 = vector.extract_strided_slice %1 {offsets = [5, 0], sizes = [1, 36], strides = [1, 1]} : vector<64x36xf32> to vector<1x36xf32>
    %41 = vector.broadcast %40 : vector<1x36xf32> to vector<9x36xf32>
    %42 = arith.subf %39, %41 : vector<9x36xf32>
    %43 = math.absf %42 : vector<9x36xf32>
    %44 = arith.addf %37, %43 : vector<9x36xf32>
    %c0_15 = arith.constant 0 : index
    %c0_16 = arith.constant 0 : index
    %c24 = arith.constant 24 : index
    %45 = vector.load %arg2[%c0_15, %c0_16, %c24] : memref<1x16x64xf32, #tpu.memory_space<vmem>>, vector<1x9x36xf32>
    %46 = vector.shape_cast %45 : vector<1x9x36xf32> to vector<9x36xf32>
    %47 = vector.extract_strided_slice %1 {offsets = [6, 0], sizes = [1, 36], strides = [1, 1]} : vector<64x36xf32> to vector<1x36xf32>
    %48 = vector.broadcast %47 : vector<1x36xf32> to vector<9x36xf32>
    %49 = arith.subf %46, %48 : vector<9x36xf32>
    %50 = math.absf %49 : vector<9x36xf32>
    %51 = arith.addf %44, %50 : vector<9x36xf32>
    %c0_17 = arith.constant 0 : index
    %c0_18 = arith.constant 0 : index
    %c28 = arith.constant 28 : index
    %52 = vector.load %arg2[%c0_17, %c0_18, %c28] : memref<1x16x64xf32, #tpu.memory_space<vmem>>, vector<1x9x36xf32>
    %53 = vector.shape_cast %52 : vector<1x9x36xf32> to vector<9x36xf32>
    %54 = vector.extract_strided_slice %1 {offsets = [7, 0], sizes = [1, 36], strides = [1, 1]} : vector<64x36xf32> to vector<1x36xf32>
    %55 = vector.broadcast %54 : vector<1x36xf32> to vector<9x36xf32>
    %56 = arith.subf %53, %55 : vector<9x36xf32>
    %57 = math.absf %56 : vector<9x36xf32>
    %58 = arith.addf %51, %57 : vector<9x36xf32>
    %c0_19 = arith.constant 0 : index
    %c1 = arith.constant 1 : index
    %c0_20 = arith.constant 0 : index
    %59 = vector.load %arg2[%c0_19, %c1, %c0_20] : memref<1x16x64xf32, #tpu.memory_space<vmem>>, vector<1x9x36xf32>
    %60 = vector.shape_cast %59 : vector<1x9x36xf32> to vector<9x36xf32>
    %61 = vector.extract_strided_slice %1 {offsets = [8, 0], sizes = [1, 36], strides = [1, 1]} : vector<64x36xf32> to vector<1x36xf32>
    %62 = vector.broadcast %61 : vector<1x36xf32> to vector<9x36xf32>
    %63 = arith.subf %60, %62 : vector<9x36xf32>
    %64 = math.absf %63 : vector<9x36xf32>
    %65 = arith.addf %58, %64 : vector<9x36xf32>
    %c0_21 = arith.constant 0 : index
    %c1_22 = arith.constant 1 : index
    %c4_23 = arith.constant 4 : index
    %66 = vector.load %arg2[%c0_21, %c1_22, %c4_23] : memref<1x16x64xf32, #tpu.memory_space<vmem>>, vector<1x9x36xf32>
    %67 = vector.shape_cast %66 : vector<1x9x36xf32> to vector<9x36xf32>
    %68 = vector.extract_strided_slice %1 {offsets = [9, 0], sizes = [1, 36], strides = [1, 1]} : vector<64x36xf32> to vector<1x36xf32>
    %69 = vector.broadcast %68 : vector<1x36xf32> to vector<9x36xf32>
    %70 = arith.subf %67, %69 : vector<9x36xf32>
    %71 = math.absf %70 : vector<9x36xf32>
    %72 = arith.addf %65, %71 : vector<9x36xf32>
    %c0_24 = arith.constant 0 : index
    %c1_25 = arith.constant 1 : index
    %c8_26 = arith.constant 8 : index
    %73 = vector.load %arg2[%c0_24, %c1_25, %c8_26] : memref<1x16x64xf32, #tpu.memory_space<vmem>>, vector<1x9x36xf32>
    %74 = vector.shape_cast %73 : vector<1x9x36xf32> to vector<9x36xf32>
    %75 = vector.extract_strided_slice %1 {offsets = [10, 0], sizes = [1, 36], strides = [1, 1]} : vector<64x36xf32> to vector<1x36xf32>
    %76 = vector.broadcast %75 : vector<1x36xf32> to vector<9x36xf32>
    %77 = arith.subf %74, %76 : vector<9x36xf32>
    %78 = math.absf %77 : vector<9x36xf32>
    %79 = arith.addf %72, %78 : vector<9x36xf32>
    %c0_27 = arith.constant 0 : index
    %c1_28 = arith.constant 1 : index
    %c12_29 = arith.constant 12 : index
    %80 = vector.load %arg2[%c0_27, %c1_28, %c12_29] : memref<1x16x64xf32, #tpu.memory_space<vmem>>, vector<1x9x36xf32>
    %81 = vector.shape_cast %80 : vector<1x9x36xf32> to vector<9x36xf32>
    %82 = vector.extract_strided_slice %1 {offsets = [11, 0], sizes = [1, 36], strides = [1, 1]} : vector<64x36xf32> to vector<1x36xf32>
    %83 = vector.broadcast %82 : vector<1x36xf32> to vector<9x36xf32>
    %84 = arith.subf %81, %83 : vector<9x36xf32>
    %85 = math.absf %84 : vector<9x36xf32>
    %86 = arith.addf %79, %85 : vector<9x36xf32>
    %c0_30 = arith.constant 0 : index
    %c1_31 = arith.constant 1 : index
    %c16_32 = arith.constant 16 : index
    %87 = vector.load %arg2[%c0_30, %c1_31, %c16_32] : memref<1x16x64xf32, #tpu.memory_space<vmem>>, vector<1x9x36xf32>
    %88 = vector.shape_cast %87 : vector<1x9x36xf32> to vector<9x36xf32>
    %89 = vector.extract_strided_slice %1 {offsets = [12, 0], sizes = [1, 36], strides = [1, 1]} : vector<64x36xf32> to vector<1x36xf32>
    %90 = vector.broadcast %89 : vector<1x36xf32> to vector<9x36xf32>
    %91 = arith.subf %88, %90 : vector<9x36xf32>
    %92 = math.absf %91 : vector<9x36xf32>
    %93 = arith.addf %86, %92 : vector<9x36xf32>
    %c0_33 = arith.constant 0 : index
    %c1_34 = arith.constant 1 : index
    %c20_35 = arith.constant 20 : index
    %94 = vector.load %arg2[%c0_33, %c1_34, %c20_35] : memref<1x16x64xf32, #tpu.memory_space<vmem>>, vector<1x9x36xf32>
    %95 = vector.shape_cast %94 : vector<1x9x36xf32> to vector<9x36xf32>
    %96 = vector.extract_strided_slice %1 {offsets = [13, 0], sizes = [1, 36], strides = [1, 1]} : vector<64x36xf32> to vector<1x36xf32>
    %97 = vector.broadcast %96 : vector<1x36xf32> to vector<9x36xf32>
    %98 = arith.subf %95, %97 : vector<9x36xf32>
    %99 = math.absf %98 : vector<9x36xf32>
    %100 = arith.addf %93, %99 : vector<9x36xf32>
    %c0_36 = arith.constant 0 : index
    %c1_37 = arith.constant 1 : index
    %c24_38 = arith.constant 24 : index
    %101 = vector.load %arg2[%c0_36, %c1_37, %c24_38] : memref<1x16x64xf32, #tpu.memory_space<vmem>>, vector<1x9x36xf32>
    %102 = vector.shape_cast %101 : vector<1x9x36xf32> to vector<9x36xf32>
    %103 = vector.extract_strided_slice %1 {offsets = [14, 0], sizes = [1, 36], strides = [1, 1]} : vector<64x36xf32> to vector<1x36xf32>
    %104 = vector.broadcast %103 : vector<1x36xf32> to vector<9x36xf32>
    %105 = arith.subf %102, %104 : vector<9x36xf32>
    %106 = math.absf %105 : vector<9x36xf32>
    %107 = arith.addf %100, %106 : vector<9x36xf32>
    %c0_39 = arith.constant 0 : index
    %c1_40 = arith.constant 1 : index
    %c28_41 = arith.constant 28 : index
    %108 = vector.load %arg2[%c0_39, %c1_40, %c28_41] : memref<1x16x64xf32, #tpu.memory_space<vmem>>, vector<1x9x36xf32>
    %109 = vector.shape_cast %108 : vector<1x9x36xf32> to vector<9x36xf32>
    %110 = vector.extract_strided_slice %1 {offsets = [15, 0], sizes = [1, 36], strides = [1, 1]} : vector<64x36xf32> to vector<1x36xf32>
    %111 = vector.broadcast %110 : vector<1x36xf32> to vector<9x36xf32>
    %112 = arith.subf %109, %111 : vector<9x36xf32>
    %113 = math.absf %112 : vector<9x36xf32>
    %114 = arith.addf %107, %113 : vector<9x36xf32>
    %c0_42 = arith.constant 0 : index
    %c2 = arith.constant 2 : index
    %c0_43 = arith.constant 0 : index
    %115 = vector.load %arg2[%c0_42, %c2, %c0_43] : memref<1x16x64xf32, #tpu.memory_space<vmem>>, vector<1x9x36xf32>
    %116 = vector.shape_cast %115 : vector<1x9x36xf32> to vector<9x36xf32>
    %117 = vector.extract_strided_slice %1 {offsets = [16, 0], sizes = [1, 36], strides = [1, 1]} : vector<64x36xf32> to vector<1x36xf32>
    %118 = vector.broadcast %117 : vector<1x36xf32> to vector<9x36xf32>
    %119 = arith.subf %116, %118 : vector<9x36xf32>
    %120 = math.absf %119 : vector<9x36xf32>
    %121 = arith.addf %114, %120 : vector<9x36xf32>
    %c0_44 = arith.constant 0 : index
    %c2_45 = arith.constant 2 : index
    %c4_46 = arith.constant 4 : index
    %122 = vector.load %arg2[%c0_44, %c2_45, %c4_46] : memref<1x16x64xf32, #tpu.memory_space<vmem>>, vector<1x9x36xf32>
    %123 = vector.shape_cast %122 : vector<1x9x36xf32> to vector<9x36xf32>
    %124 = vector.extract_strided_slice %1 {offsets = [17, 0], sizes = [1, 36], strides = [1, 1]} : vector<64x36xf32> to vector<1x36xf32>
    %125 = vector.broadcast %124 : vector<1x36xf32> to vector<9x36xf32>
    %126 = arith.subf %123, %125 : vector<9x36xf32>
    %127 = math.absf %126 : vector<9x36xf32>
    %128 = arith.addf %121, %127 : vector<9x36xf32>
    %c0_47 = arith.constant 0 : index
    %c2_48 = arith.constant 2 : index
    %c8_49 = arith.constant 8 : index
    %129 = vector.load %arg2[%c0_47, %c2_48, %c8_49] : memref<1x16x64xf32, #tpu.memory_space<vmem>>, vector<1x9x36xf32>
    %130 = vector.shape_cast %129 : vector<1x9x36xf32> to vector<9x36xf32>
    %131 = vector.extract_strided_slice %1 {offsets = [18, 0], sizes = [1, 36], strides = [1, 1]} : vector<64x36xf32> to vector<1x36xf32>
    %132 = vector.broadcast %131 : vector<1x36xf32> to vector<9x36xf32>
    %133 = arith.subf %130, %132 : vector<9x36xf32>
    %134 = math.absf %133 : vector<9x36xf32>
    %135 = arith.addf %128, %134 : vector<9x36xf32>
    %c0_50 = arith.constant 0 : index
    %c2_51 = arith.constant 2 : index
    %c12_52 = arith.constant 12 : index
    %136 = vector.load %arg2[%c0_50, %c2_51, %c12_52] : memref<1x16x64xf32, #tpu.memory_space<vmem>>, vector<1x9x36xf32>
    %137 = vector.shape_cast %136 : vector<1x9x36xf32> to vector<9x36xf32>
    %138 = vector.extract_strided_slice %1 {offsets = [19, 0], sizes = [1, 36], strides = [1, 1]} : vector<64x36xf32> to vector<1x36xf32>
    %139 = vector.broadcast %138 : vector<1x36xf32> to vector<9x36xf32>
    %140 = arith.subf %137, %139 : vector<9x36xf32>
    %141 = math.absf %140 : vector<9x36xf32>
    %142 = arith.addf %135, %141 : vector<9x36xf32>
    %c0_53 = arith.constant 0 : index
    %c2_54 = arith.constant 2 : index
    %c16_55 = arith.constant 16 : index
    %143 = vector.load %arg2[%c0_53, %c2_54, %c16_55] : memref<1x16x64xf32, #tpu.memory_space<vmem>>, vector<1x9x36xf32>
    %144 = vector.shape_cast %143 : vector<1x9x36xf32> to vector<9x36xf32>
    %145 = vector.extract_strided_slice %1 {offsets = [20, 0], sizes = [1, 36], strides = [1, 1]} : vector<64x36xf32> to vector<1x36xf32>
    %146 = vector.broadcast %145 : vector<1x36xf32> to vector<9x36xf32>
    %147 = arith.subf %144, %146 : vector<9x36xf32>
    %148 = math.absf %147 : vector<9x36xf32>
    %149 = arith.addf %142, %148 : vector<9x36xf32>
    %c0_56 = arith.constant 0 : index
    %c2_57 = arith.constant 2 : index
    %c20_58 = arith.constant 20 : index
    %150 = vector.load %arg2[%c0_56, %c2_57, %c20_58] : memref<1x16x64xf32, #tpu.memory_space<vmem>>, vector<1x9x36xf32>
    %151 = vector.shape_cast %150 : vector<1x9x36xf32> to vector<9x36xf32>
    %152 = vector.extract_strided_slice %1 {offsets = [21, 0], sizes = [1, 36], strides = [1, 1]} : vector<64x36xf32> to vector<1x36xf32>
    %153 = vector.broadcast %152 : vector<1x36xf32> to vector<9x36xf32>
    %154 = arith.subf %151, %153 : vector<9x36xf32>
    %155 = math.absf %154 : vector<9x36xf32>
    %156 = arith.addf %149, %155 : vector<9x36xf32>
    %c0_59 = arith.constant 0 : index
    %c2_60 = arith.constant 2 : index
    %c24_61 = arith.constant 24 : index
    %157 = vector.load %arg2[%c0_59, %c2_60, %c24_61] : memref<1x16x64xf32, #tpu.memory_space<vmem>>, vector<1x9x36xf32>
    %158 = vector.shape_cast %157 : vector<1x9x36xf32> to vector<9x36xf32>
    %159 = vector.extract_strided_slice %1 {offsets = [22, 0], sizes = [1, 36], strides = [1, 1]} : vector<64x36xf32> to vector<1x36xf32>
    %160 = vector.broadcast %159 : vector<1x36xf32> to vector<9x36xf32>
    %161 = arith.subf %158, %160 : vector<9x36xf32>
    %162 = math.absf %161 : vector<9x36xf32>
    %163 = arith.addf %156, %162 : vector<9x36xf32>
    %c0_62 = arith.constant 0 : index
    %c2_63 = arith.constant 2 : index
    %c28_64 = arith.constant 28 : index
    %164 = vector.load %arg2[%c0_62, %c2_63, %c28_64] : memref<1x16x64xf32, #tpu.memory_space<vmem>>, vector<1x9x36xf32>
    %165 = vector.shape_cast %164 : vector<1x9x36xf32> to vector<9x36xf32>
    %166 = vector.extract_strided_slice %1 {offsets = [23, 0], sizes = [1, 36], strides = [1, 1]} : vector<64x36xf32> to vector<1x36xf32>
    %167 = vector.broadcast %166 : vector<1x36xf32> to vector<9x36xf32>
    %168 = arith.subf %165, %167 : vector<9x36xf32>
    %169 = math.absf %168 : vector<9x36xf32>
    %170 = arith.addf %163, %169 : vector<9x36xf32>
    %c0_65 = arith.constant 0 : index
    %c3 = arith.constant 3 : index
    %c0_66 = arith.constant 0 : index
    %171 = vector.load %arg2[%c0_65, %c3, %c0_66] : memref<1x16x64xf32, #tpu.memory_space<vmem>>, vector<1x9x36xf32>
    %172 = vector.shape_cast %171 : vector<1x9x36xf32> to vector<9x36xf32>
    %173 = vector.extract_strided_slice %1 {offsets = [24, 0], sizes = [1, 36], strides = [1, 1]} : vector<64x36xf32> to vector<1x36xf32>
    %174 = vector.broadcast %173 : vector<1x36xf32> to vector<9x36xf32>
    %175 = arith.subf %172, %174 : vector<9x36xf32>
    %176 = math.absf %175 : vector<9x36xf32>
    %177 = arith.addf %170, %176 : vector<9x36xf32>
    %c0_67 = arith.constant 0 : index
    %c3_68 = arith.constant 3 : index
    %c4_69 = arith.constant 4 : index
    %178 = vector.load %arg2[%c0_67, %c3_68, %c4_69] : memref<1x16x64xf32, #tpu.memory_space<vmem>>, vector<1x9x36xf32>
    %179 = vector.shape_cast %178 : vector<1x9x36xf32> to vector<9x36xf32>
    %180 = vector.extract_strided_slice %1 {offsets = [25, 0], sizes = [1, 36], strides = [1, 1]} : vector<64x36xf32> to vector<1x36xf32>
    %181 = vector.broadcast %180 : vector<1x36xf32> to vector<9x36xf32>
    %182 = arith.subf %179, %181 : vector<9x36xf32>
    %183 = math.absf %182 : vector<9x36xf32>
    %184 = arith.addf %177, %183 : vector<9x36xf32>
    %c0_70 = arith.constant 0 : index
    %c3_71 = arith.constant 3 : index
    %c8_72 = arith.constant 8 : index
    %185 = vector.load %arg2[%c0_70, %c3_71, %c8_72] : memref<1x16x64xf32, #tpu.memory_space<vmem>>, vector<1x9x36xf32>
    %186 = vector.shape_cast %185 : vector<1x9x36xf32> to vector<9x36xf32>
    %187 = vector.extract_strided_slice %1 {offsets = [26, 0], sizes = [1, 36], strides = [1, 1]} : vector<64x36xf32> to vector<1x36xf32>
    %188 = vector.broadcast %187 : vector<1x36xf32> to vector<9x36xf32>
    %189 = arith.subf %186, %188 : vector<9x36xf32>
    %190 = math.absf %189 : vector<9x36xf32>
    %191 = arith.addf %184, %190 : vector<9x36xf32>
    %c0_73 = arith.constant 0 : index
    %c3_74 = arith.constant 3 : index
    %c12_75 = arith.constant 12 : index
    %192 = vector.load %arg2[%c0_73, %c3_74, %c12_75] : memref<1x16x64xf32, #tpu.memory_space<vmem>>, vector<1x9x36xf32>
    %193 = vector.shape_cast %192 : vector<1x9x36xf32> to vector<9x36xf32>
    %194 = vector.extract_strided_slice %1 {offsets = [27, 0], sizes = [1, 36], strides = [1, 1]} : vector<64x36xf32> to vector<1x36xf32>
    %195 = vector.broadcast %194 : vector<1x36xf32> to vector<9x36xf32>
    %196 = arith.subf %193, %195 : vector<9x36xf32>
    %197 = math.absf %196 : vector<9x36xf32>
    %198 = arith.addf %191, %197 : vector<9x36xf32>
    %c0_76 = arith.constant 0 : index
    %c3_77 = arith.constant 3 : index
    %c16_78 = arith.constant 16 : index
    %199 = vector.load %arg2[%c0_76, %c3_77, %c16_78] : memref<1x16x64xf32, #tpu.memory_space<vmem>>, vector<1x9x36xf32>
    %200 = vector.shape_cast %199 : vector<1x9x36xf32> to vector<9x36xf32>
    %201 = vector.extract_strided_slice %1 {offsets = [28, 0], sizes = [1, 36], strides = [1, 1]} : vector<64x36xf32> to vector<1x36xf32>
    %202 = vector.broadcast %201 : vector<1x36xf32> to vector<9x36xf32>
    %203 = arith.subf %200, %202 : vector<9x36xf32>
    %204 = math.absf %203 : vector<9x36xf32>
    %205 = arith.addf %198, %204 : vector<9x36xf32>
    %c0_79 = arith.constant 0 : index
    %c3_80 = arith.constant 3 : index
    %c20_81 = arith.constant 20 : index
    %206 = vector.load %arg2[%c0_79, %c3_80, %c20_81] : memref<1x16x64xf32, #tpu.memory_space<vmem>>, vector<1x9x36xf32>
    %207 = vector.shape_cast %206 : vector<1x9x36xf32> to vector<9x36xf32>
    %208 = vector.extract_strided_slice %1 {offsets = [29, 0], sizes = [1, 36], strides = [1, 1]} : vector<64x36xf32> to vector<1x36xf32>
    %209 = vector.broadcast %208 : vector<1x36xf32> to vector<9x36xf32>
    %210 = arith.subf %207, %209 : vector<9x36xf32>
    %211 = math.absf %210 : vector<9x36xf32>
    %212 = arith.addf %205, %211 : vector<9x36xf32>
    %c0_82 = arith.constant 0 : index
    %c3_83 = arith.constant 3 : index
    %c24_84 = arith.constant 24 : index
    %213 = vector.load %arg2[%c0_82, %c3_83, %c24_84] : memref<1x16x64xf32, #tpu.memory_space<vmem>>, vector<1x9x36xf32>
    %214 = vector.shape_cast %213 : vector<1x9x36xf32> to vector<9x36xf32>
    %215 = vector.extract_strided_slice %1 {offsets = [30, 0], sizes = [1, 36], strides = [1, 1]} : vector<64x36xf32> to vector<1x36xf32>
    %216 = vector.broadcast %215 : vector<1x36xf32> to vector<9x36xf32>
    %217 = arith.subf %214, %216 : vector<9x36xf32>
    %218 = math.absf %217 : vector<9x36xf32>
    %219 = arith.addf %212, %218 : vector<9x36xf32>
    %c0_85 = arith.constant 0 : index
    %c3_86 = arith.constant 3 : index
    %c28_87 = arith.constant 28 : index
    %220 = vector.load %arg2[%c0_85, %c3_86, %c28_87] : memref<1x16x64xf32, #tpu.memory_space<vmem>>, vector<1x9x36xf32>
    %221 = vector.shape_cast %220 : vector<1x9x36xf32> to vector<9x36xf32>
    %222 = vector.extract_strided_slice %1 {offsets = [31, 0], sizes = [1, 36], strides = [1, 1]} : vector<64x36xf32> to vector<1x36xf32>
    %223 = vector.broadcast %222 : vector<1x36xf32> to vector<9x36xf32>
    %224 = arith.subf %221, %223 : vector<9x36xf32>
    %225 = math.absf %224 : vector<9x36xf32>
    %226 = arith.addf %219, %225 : vector<9x36xf32>
    %c0_88 = arith.constant 0 : index
    %c4_89 = arith.constant 4 : index
    %c0_90 = arith.constant 0 : index
    %227 = vector.load %arg2[%c0_88, %c4_89, %c0_90] : memref<1x16x64xf32, #tpu.memory_space<vmem>>, vector<1x9x36xf32>
    %228 = vector.shape_cast %227 : vector<1x9x36xf32> to vector<9x36xf32>
    %229 = vector.extract_strided_slice %1 {offsets = [32, 0], sizes = [1, 36], strides = [1, 1]} : vector<64x36xf32> to vector<1x36xf32>
    %230 = vector.broadcast %229 : vector<1x36xf32> to vector<9x36xf32>
    %231 = arith.subf %228, %230 : vector<9x36xf32>
    %232 = math.absf %231 : vector<9x36xf32>
    %233 = arith.addf %226, %232 : vector<9x36xf32>
    %c0_91 = arith.constant 0 : index
    %c4_92 = arith.constant 4 : index
    %c4_93 = arith.constant 4 : index
    %234 = vector.load %arg2[%c0_91, %c4_92, %c4_93] : memref<1x16x64xf32, #tpu.memory_space<vmem>>, vector<1x9x36xf32>
    %235 = vector.shape_cast %234 : vector<1x9x36xf32> to vector<9x36xf32>
    %236 = vector.extract_strided_slice %1 {offsets = [33, 0], sizes = [1, 36], strides = [1, 1]} : vector<64x36xf32> to vector<1x36xf32>
    %237 = vector.broadcast %236 : vector<1x36xf32> to vector<9x36xf32>
    %238 = arith.subf %235, %237 : vector<9x36xf32>
    %239 = math.absf %238 : vector<9x36xf32>
    %240 = arith.addf %233, %239 : vector<9x36xf32>
    %c0_94 = arith.constant 0 : index
    %c4_95 = arith.constant 4 : index
    %c8_96 = arith.constant 8 : index
    %241 = vector.load %arg2[%c0_94, %c4_95, %c8_96] : memref<1x16x64xf32, #tpu.memory_space<vmem>>, vector<1x9x36xf32>
    %242 = vector.shape_cast %241 : vector<1x9x36xf32> to vector<9x36xf32>
    %243 = vector.extract_strided_slice %1 {offsets = [34, 0], sizes = [1, 36], strides = [1, 1]} : vector<64x36xf32> to vector<1x36xf32>
    %244 = vector.broadcast %243 : vector<1x36xf32> to vector<9x36xf32>
    %245 = arith.subf %242, %244 : vector<9x36xf32>
    %246 = math.absf %245 : vector<9x36xf32>
    %247 = arith.addf %240, %246 : vector<9x36xf32>
    %c0_97 = arith.constant 0 : index
    %c4_98 = arith.constant 4 : index
    %c12_99 = arith.constant 12 : index
    %248 = vector.load %arg2[%c0_97, %c4_98, %c12_99] : memref<1x16x64xf32, #tpu.memory_space<vmem>>, vector<1x9x36xf32>
    %249 = vector.shape_cast %248 : vector<1x9x36xf32> to vector<9x36xf32>
    %250 = vector.extract_strided_slice %1 {offsets = [35, 0], sizes = [1, 36], strides = [1, 1]} : vector<64x36xf32> to vector<1x36xf32>
    %251 = vector.broadcast %250 : vector<1x36xf32> to vector<9x36xf32>
    %252 = arith.subf %249, %251 : vector<9x36xf32>
    %253 = math.absf %252 : vector<9x36xf32>
    %254 = arith.addf %247, %253 : vector<9x36xf32>
    %c0_100 = arith.constant 0 : index
    %c4_101 = arith.constant 4 : index
    %c16_102 = arith.constant 16 : index
    %255 = vector.load %arg2[%c0_100, %c4_101, %c16_102] : memref<1x16x64xf32, #tpu.memory_space<vmem>>, vector<1x9x36xf32>
    %256 = vector.shape_cast %255 : vector<1x9x36xf32> to vector<9x36xf32>
    %257 = vector.extract_strided_slice %1 {offsets = [36, 0], sizes = [1, 36], strides = [1, 1]} : vector<64x36xf32> to vector<1x36xf32>
    %258 = vector.broadcast %257 : vector<1x36xf32> to vector<9x36xf32>
    %259 = arith.subf %256, %258 : vector<9x36xf32>
    %260 = math.absf %259 : vector<9x36xf32>
    %261 = arith.addf %254, %260 : vector<9x36xf32>
    %c0_103 = arith.constant 0 : index
    %c4_104 = arith.constant 4 : index
    %c20_105 = arith.constant 20 : index
    %262 = vector.load %arg2[%c0_103, %c4_104, %c20_105] : memref<1x16x64xf32, #tpu.memory_space<vmem>>, vector<1x9x36xf32>
    %263 = vector.shape_cast %262 : vector<1x9x36xf32> to vector<9x36xf32>
    %264 = vector.extract_strided_slice %1 {offsets = [37, 0], sizes = [1, 36], strides = [1, 1]} : vector<64x36xf32> to vector<1x36xf32>
    %265 = vector.broadcast %264 : vector<1x36xf32> to vector<9x36xf32>
    %266 = arith.subf %263, %265 : vector<9x36xf32>
    %267 = math.absf %266 : vector<9x36xf32>
    %268 = arith.addf %261, %267 : vector<9x36xf32>
    %c0_106 = arith.constant 0 : index
    %c4_107 = arith.constant 4 : index
    %c24_108 = arith.constant 24 : index
    %269 = vector.load %arg2[%c0_106, %c4_107, %c24_108] : memref<1x16x64xf32, #tpu.memory_space<vmem>>, vector<1x9x36xf32>
    %270 = vector.shape_cast %269 : vector<1x9x36xf32> to vector<9x36xf32>
    %271 = vector.extract_strided_slice %1 {offsets = [38, 0], sizes = [1, 36], strides = [1, 1]} : vector<64x36xf32> to vector<1x36xf32>
    %272 = vector.broadcast %271 : vector<1x36xf32> to vector<9x36xf32>
    %273 = arith.subf %270, %272 : vector<9x36xf32>
    %274 = math.absf %273 : vector<9x36xf32>
    %275 = arith.addf %268, %274 : vector<9x36xf32>
    %c0_109 = arith.constant 0 : index
    %c4_110 = arith.constant 4 : index
    %c28_111 = arith.constant 28 : index
    %276 = vector.load %arg2[%c0_109, %c4_110, %c28_111] : memref<1x16x64xf32, #tpu.memory_space<vmem>>, vector<1x9x36xf32>
    %277 = vector.shape_cast %276 : vector<1x9x36xf32> to vector<9x36xf32>
    %278 = vector.extract_strided_slice %1 {offsets = [39, 0], sizes = [1, 36], strides = [1, 1]} : vector<64x36xf32> to vector<1x36xf32>
    %279 = vector.broadcast %278 : vector<1x36xf32> to vector<9x36xf32>
    %280 = arith.subf %277, %279 : vector<9x36xf32>
    %281 = math.absf %280 : vector<9x36xf32>
    %282 = arith.addf %275, %281 : vector<9x36xf32>
    %c0_112 = arith.constant 0 : index
    %c5 = arith.constant 5 : index
    %c0_113 = arith.constant 0 : index
    %283 = vector.load %arg2[%c0_112, %c5, %c0_113] : memref<1x16x64xf32, #tpu.memory_space<vmem>>, vector<1x9x36xf32>
    %284 = vector.shape_cast %283 : vector<1x9x36xf32> to vector<9x36xf32>
    %285 = vector.extract_strided_slice %1 {offsets = [40, 0], sizes = [1, 36], strides = [1, 1]} : vector<64x36xf32> to vector<1x36xf32>
    %286 = vector.broadcast %285 : vector<1x36xf32> to vector<9x36xf32>
    %287 = arith.subf %284, %286 : vector<9x36xf32>
    %288 = math.absf %287 : vector<9x36xf32>
    %289 = arith.addf %282, %288 : vector<9x36xf32>
    %c0_114 = arith.constant 0 : index
    %c5_115 = arith.constant 5 : index
    %c4_116 = arith.constant 4 : index
    %290 = vector.load %arg2[%c0_114, %c5_115, %c4_116] : memref<1x16x64xf32, #tpu.memory_space<vmem>>, vector<1x9x36xf32>
    %291 = vector.shape_cast %290 : vector<1x9x36xf32> to vector<9x36xf32>
    %292 = vector.extract_strided_slice %1 {offsets = [41, 0], sizes = [1, 36], strides = [1, 1]} : vector<64x36xf32> to vector<1x36xf32>
    %293 = vector.broadcast %292 : vector<1x36xf32> to vector<9x36xf32>
    %294 = arith.subf %291, %293 : vector<9x36xf32>
    %295 = math.absf %294 : vector<9x36xf32>
    %296 = arith.addf %289, %295 : vector<9x36xf32>
    %c0_117 = arith.constant 0 : index
    %c5_118 = arith.constant 5 : index
    %c8_119 = arith.constant 8 : index
    %297 = vector.load %arg2[%c0_117, %c5_118, %c8_119] : memref<1x16x64xf32, #tpu.memory_space<vmem>>, vector<1x9x36xf32>
    %298 = vector.shape_cast %297 : vector<1x9x36xf32> to vector<9x36xf32>
    %299 = vector.extract_strided_slice %1 {offsets = [42, 0], sizes = [1, 36], strides = [1, 1]} : vector<64x36xf32> to vector<1x36xf32>
    %300 = vector.broadcast %299 : vector<1x36xf32> to vector<9x36xf32>
    %301 = arith.subf %298, %300 : vector<9x36xf32>
    %302 = math.absf %301 : vector<9x36xf32>
    %303 = arith.addf %296, %302 : vector<9x36xf32>
    %c0_120 = arith.constant 0 : index
    %c5_121 = arith.constant 5 : index
    %c12_122 = arith.constant 12 : index
    %304 = vector.load %arg2[%c0_120, %c5_121, %c12_122] : memref<1x16x64xf32, #tpu.memory_space<vmem>>, vector<1x9x36xf32>
    %305 = vector.shape_cast %304 : vector<1x9x36xf32> to vector<9x36xf32>
    %306 = vector.extract_strided_slice %1 {offsets = [43, 0], sizes = [1, 36], strides = [1, 1]} : vector<64x36xf32> to vector<1x36xf32>
    %307 = vector.broadcast %306 : vector<1x36xf32> to vector<9x36xf32>
    %308 = arith.subf %305, %307 : vector<9x36xf32>
    %309 = math.absf %308 : vector<9x36xf32>
    %310 = arith.addf %303, %309 : vector<9x36xf32>
    %c0_123 = arith.constant 0 : index
    %c5_124 = arith.constant 5 : index
    %c16_125 = arith.constant 16 : index
    %311 = vector.load %arg2[%c0_123, %c5_124, %c16_125] : memref<1x16x64xf32, #tpu.memory_space<vmem>>, vector<1x9x36xf32>
    %312 = vector.shape_cast %311 : vector<1x9x36xf32> to vector<9x36xf32>
    %313 = vector.extract_strided_slice %1 {offsets = [44, 0], sizes = [1, 36], strides = [1, 1]} : vector<64x36xf32> to vector<1x36xf32>
    %314 = vector.broadcast %313 : vector<1x36xf32> to vector<9x36xf32>
    %315 = arith.subf %312, %314 : vector<9x36xf32>
    %316 = math.absf %315 : vector<9x36xf32>
    %317 = arith.addf %310, %316 : vector<9x36xf32>
    %c0_126 = arith.constant 0 : index
    %c5_127 = arith.constant 5 : index
    %c20_128 = arith.constant 20 : index
    %318 = vector.load %arg2[%c0_126, %c5_127, %c20_128] : memref<1x16x64xf32, #tpu.memory_space<vmem>>, vector<1x9x36xf32>
    %319 = vector.shape_cast %318 : vector<1x9x36xf32> to vector<9x36xf32>
    %320 = vector.extract_strided_slice %1 {offsets = [45, 0], sizes = [1, 36], strides = [1, 1]} : vector<64x36xf32> to vector<1x36xf32>
    %321 = vector.broadcast %320 : vector<1x36xf32> to vector<9x36xf32>
    %322 = arith.subf %319, %321 : vector<9x36xf32>
    %323 = math.absf %322 : vector<9x36xf32>
    %324 = arith.addf %317, %323 : vector<9x36xf32>
    %c0_129 = arith.constant 0 : index
    %c5_130 = arith.constant 5 : index
    %c24_131 = arith.constant 24 : index
    %325 = vector.load %arg2[%c0_129, %c5_130, %c24_131] : memref<1x16x64xf32, #tpu.memory_space<vmem>>, vector<1x9x36xf32>
    %326 = vector.shape_cast %325 : vector<1x9x36xf32> to vector<9x36xf32>
    %327 = vector.extract_strided_slice %1 {offsets = [46, 0], sizes = [1, 36], strides = [1, 1]} : vector<64x36xf32> to vector<1x36xf32>
    %328 = vector.broadcast %327 : vector<1x36xf32> to vector<9x36xf32>
    %329 = arith.subf %326, %328 : vector<9x36xf32>
    %330 = math.absf %329 : vector<9x36xf32>
    %331 = arith.addf %324, %330 : vector<9x36xf32>
    %c0_132 = arith.constant 0 : index
    %c5_133 = arith.constant 5 : index
    %c28_134 = arith.constant 28 : index
    %332 = vector.load %arg2[%c0_132, %c5_133, %c28_134] : memref<1x16x64xf32, #tpu.memory_space<vmem>>, vector<1x9x36xf32>
    %333 = vector.shape_cast %332 : vector<1x9x36xf32> to vector<9x36xf32>
    %334 = vector.extract_strided_slice %1 {offsets = [47, 0], sizes = [1, 36], strides = [1, 1]} : vector<64x36xf32> to vector<1x36xf32>
    %335 = vector.broadcast %334 : vector<1x36xf32> to vector<9x36xf32>
    %336 = arith.subf %333, %335 : vector<9x36xf32>
    %337 = math.absf %336 : vector<9x36xf32>
    %338 = arith.addf %331, %337 : vector<9x36xf32>
    %c0_135 = arith.constant 0 : index
    %c6 = arith.constant 6 : index
    %c0_136 = arith.constant 0 : index
    %339 = vector.load %arg2[%c0_135, %c6, %c0_136] : memref<1x16x64xf32, #tpu.memory_space<vmem>>, vector<1x9x36xf32>
    %340 = vector.shape_cast %339 : vector<1x9x36xf32> to vector<9x36xf32>
    %341 = vector.extract_strided_slice %1 {offsets = [48, 0], sizes = [1, 36], strides = [1, 1]} : vector<64x36xf32> to vector<1x36xf32>
    %342 = vector.broadcast %341 : vector<1x36xf32> to vector<9x36xf32>
    %343 = arith.subf %340, %342 : vector<9x36xf32>
    %344 = math.absf %343 : vector<9x36xf32>
    %345 = arith.addf %338, %344 : vector<9x36xf32>
    %c0_137 = arith.constant 0 : index
    %c6_138 = arith.constant 6 : index
    %c4_139 = arith.constant 4 : index
    %346 = vector.load %arg2[%c0_137, %c6_138, %c4_139] : memref<1x16x64xf32, #tpu.memory_space<vmem>>, vector<1x9x36xf32>
    %347 = vector.shape_cast %346 : vector<1x9x36xf32> to vector<9x36xf32>
    %348 = vector.extract_strided_slice %1 {offsets = [49, 0], sizes = [1, 36], strides = [1, 1]} : vector<64x36xf32> to vector<1x36xf32>
    %349 = vector.broadcast %348 : vector<1x36xf32> to vector<9x36xf32>
    %350 = arith.subf %347, %349 : vector<9x36xf32>
    %351 = math.absf %350 : vector<9x36xf32>
    %352 = arith.addf %345, %351 : vector<9x36xf32>
    %c0_140 = arith.constant 0 : index
    %c6_141 = arith.constant 6 : index
    %c8_142 = arith.constant 8 : index
    %353 = vector.load %arg2[%c0_140, %c6_141, %c8_142] : memref<1x16x64xf32, #tpu.memory_space<vmem>>, vector<1x9x36xf32>
    %354 = vector.shape_cast %353 : vector<1x9x36xf32> to vector<9x36xf32>
    %355 = vector.extract_strided_slice %1 {offsets = [50, 0], sizes = [1, 36], strides = [1, 1]} : vector<64x36xf32> to vector<1x36xf32>
    %356 = vector.broadcast %355 : vector<1x36xf32> to vector<9x36xf32>
    %357 = arith.subf %354, %356 : vector<9x36xf32>
    %358 = math.absf %357 : vector<9x36xf32>
    %359 = arith.addf %352, %358 : vector<9x36xf32>
    %c0_143 = arith.constant 0 : index
    %c6_144 = arith.constant 6 : index
    %c12_145 = arith.constant 12 : index
    %360 = vector.load %arg2[%c0_143, %c6_144, %c12_145] : memref<1x16x64xf32, #tpu.memory_space<vmem>>, vector<1x9x36xf32>
    %361 = vector.shape_cast %360 : vector<1x9x36xf32> to vector<9x36xf32>
    %362 = vector.extract_strided_slice %1 {offsets = [51, 0], sizes = [1, 36], strides = [1, 1]} : vector<64x36xf32> to vector<1x36xf32>
    %363 = vector.broadcast %362 : vector<1x36xf32> to vector<9x36xf32>
    %364 = arith.subf %361, %363 : vector<9x36xf32>
    %365 = math.absf %364 : vector<9x36xf32>
    %366 = arith.addf %359, %365 : vector<9x36xf32>
    %c0_146 = arith.constant 0 : index
    %c6_147 = arith.constant 6 : index
    %c16_148 = arith.constant 16 : index
    %367 = vector.load %arg2[%c0_146, %c6_147, %c16_148] : memref<1x16x64xf32, #tpu.memory_space<vmem>>, vector<1x9x36xf32>
    %368 = vector.shape_cast %367 : vector<1x9x36xf32> to vector<9x36xf32>
    %369 = vector.extract_strided_slice %1 {offsets = [52, 0], sizes = [1, 36], strides = [1, 1]} : vector<64x36xf32> to vector<1x36xf32>
    %370 = vector.broadcast %369 : vector<1x36xf32> to vector<9x36xf32>
    %371 = arith.subf %368, %370 : vector<9x36xf32>
    %372 = math.absf %371 : vector<9x36xf32>
    %373 = arith.addf %366, %372 : vector<9x36xf32>
    %c0_149 = arith.constant 0 : index
    %c6_150 = arith.constant 6 : index
    %c20_151 = arith.constant 20 : index
    %374 = vector.load %arg2[%c0_149, %c6_150, %c20_151] : memref<1x16x64xf32, #tpu.memory_space<vmem>>, vector<1x9x36xf32>
    %375 = vector.shape_cast %374 : vector<1x9x36xf32> to vector<9x36xf32>
    %376 = vector.extract_strided_slice %1 {offsets = [53, 0], sizes = [1, 36], strides = [1, 1]} : vector<64x36xf32> to vector<1x36xf32>
    %377 = vector.broadcast %376 : vector<1x36xf32> to vector<9x36xf32>
    %378 = arith.subf %375, %377 : vector<9x36xf32>
    %379 = math.absf %378 : vector<9x36xf32>
    %380 = arith.addf %373, %379 : vector<9x36xf32>
    %c0_152 = arith.constant 0 : index
    %c6_153 = arith.constant 6 : index
    %c24_154 = arith.constant 24 : index
    %381 = vector.load %arg2[%c0_152, %c6_153, %c24_154] : memref<1x16x64xf32, #tpu.memory_space<vmem>>, vector<1x9x36xf32>
    %382 = vector.shape_cast %381 : vector<1x9x36xf32> to vector<9x36xf32>
    %383 = vector.extract_strided_slice %1 {offsets = [54, 0], sizes = [1, 36], strides = [1, 1]} : vector<64x36xf32> to vector<1x36xf32>
    %384 = vector.broadcast %383 : vector<1x36xf32> to vector<9x36xf32>
    %385 = arith.subf %382, %384 : vector<9x36xf32>
    %386 = math.absf %385 : vector<9x36xf32>
    %387 = arith.addf %380, %386 : vector<9x36xf32>
    %c0_155 = arith.constant 0 : index
    %c6_156 = arith.constant 6 : index
    %c28_157 = arith.constant 28 : index
    %388 = vector.load %arg2[%c0_155, %c6_156, %c28_157] : memref<1x16x64xf32, #tpu.memory_space<vmem>>, vector<1x9x36xf32>
    %389 = vector.shape_cast %388 : vector<1x9x36xf32> to vector<9x36xf32>
    %390 = vector.extract_strided_slice %1 {offsets = [55, 0], sizes = [1, 36], strides = [1, 1]} : vector<64x36xf32> to vector<1x36xf32>
    %391 = vector.broadcast %390 : vector<1x36xf32> to vector<9x36xf32>
    %392 = arith.subf %389, %391 : vector<9x36xf32>
    %393 = math.absf %392 : vector<9x36xf32>
    %394 = arith.addf %387, %393 : vector<9x36xf32>
    %c0_158 = arith.constant 0 : index
    %c7 = arith.constant 7 : index
    %c0_159 = arith.constant 0 : index
    %395 = vector.load %arg2[%c0_158, %c7, %c0_159] : memref<1x16x64xf32, #tpu.memory_space<vmem>>, vector<1x9x36xf32>
    %396 = vector.shape_cast %395 : vector<1x9x36xf32> to vector<9x36xf32>
    %397 = vector.extract_strided_slice %1 {offsets = [56, 0], sizes = [1, 36], strides = [1, 1]} : vector<64x36xf32> to vector<1x36xf32>
    %398 = vector.broadcast %397 : vector<1x36xf32> to vector<9x36xf32>
    %399 = arith.subf %396, %398 : vector<9x36xf32>
    %400 = math.absf %399 : vector<9x36xf32>
    %401 = arith.addf %394, %400 : vector<9x36xf32>
    %c0_160 = arith.constant 0 : index
    %c7_161 = arith.constant 7 : index
    %c4_162 = arith.constant 4 : index
    %402 = vector.load %arg2[%c0_160, %c7_161, %c4_162] : memref<1x16x64xf32, #tpu.memory_space<vmem>>, vector<1x9x36xf32>
    %403 = vector.shape_cast %402 : vector<1x9x36xf32> to vector<9x36xf32>
    %404 = vector.extract_strided_slice %1 {offsets = [57, 0], sizes = [1, 36], strides = [1, 1]} : vector<64x36xf32> to vector<1x36xf32>
    %405 = vector.broadcast %404 : vector<1x36xf32> to vector<9x36xf32>
    %406 = arith.subf %403, %405 : vector<9x36xf32>
    %407 = math.absf %406 : vector<9x36xf32>
    %408 = arith.addf %401, %407 : vector<9x36xf32>
    %c0_163 = arith.constant 0 : index
    %c7_164 = arith.constant 7 : index
    %c8_165 = arith.constant 8 : index
    %409 = vector.load %arg2[%c0_163, %c7_164, %c8_165] : memref<1x16x64xf32, #tpu.memory_space<vmem>>, vector<1x9x36xf32>
    %410 = vector.shape_cast %409 : vector<1x9x36xf32> to vector<9x36xf32>
    %411 = vector.extract_strided_slice %1 {offsets = [58, 0], sizes = [1, 36], strides = [1, 1]} : vector<64x36xf32> to vector<1x36xf32>
    %412 = vector.broadcast %411 : vector<1x36xf32> to vector<9x36xf32>
    %413 = arith.subf %410, %412 : vector<9x36xf32>
    %414 = math.absf %413 : vector<9x36xf32>
    %415 = arith.addf %408, %414 : vector<9x36xf32>
    %c0_166 = arith.constant 0 : index
    %c7_167 = arith.constant 7 : index
    %c12_168 = arith.constant 12 : index
    %416 = vector.load %arg2[%c0_166, %c7_167, %c12_168] : memref<1x16x64xf32, #tpu.memory_space<vmem>>, vector<1x9x36xf32>
    %417 = vector.shape_cast %416 : vector<1x9x36xf32> to vector<9x36xf32>
    %418 = vector.extract_strided_slice %1 {offsets = [59, 0], sizes = [1, 36], strides = [1, 1]} : vector<64x36xf32> to vector<1x36xf32>
    %419 = vector.broadcast %418 : vector<1x36xf32> to vector<9x36xf32>
    %420 = arith.subf %417, %419 : vector<9x36xf32>
    %421 = math.absf %420 : vector<9x36xf32>
    %422 = arith.addf %415, %421 : vector<9x36xf32>
    %c0_169 = arith.constant 0 : index
    %c7_170 = arith.constant 7 : index
    %c16_171 = arith.constant 16 : index
    %423 = vector.load %arg2[%c0_169, %c7_170, %c16_171] : memref<1x16x64xf32, #tpu.memory_space<vmem>>, vector<1x9x36xf32>
    %424 = vector.shape_cast %423 : vector<1x9x36xf32> to vector<9x36xf32>
    %425 = vector.extract_strided_slice %1 {offsets = [60, 0], sizes = [1, 36], strides = [1, 1]} : vector<64x36xf32> to vector<1x36xf32>
    %426 = vector.broadcast %425 : vector<1x36xf32> to vector<9x36xf32>
    %427 = arith.subf %424, %426 : vector<9x36xf32>
    %428 = math.absf %427 : vector<9x36xf32>
    %429 = arith.addf %422, %428 : vector<9x36xf32>
    %c0_172 = arith.constant 0 : index
    %c7_173 = arith.constant 7 : index
    %c20_174 = arith.constant 20 : index
    %430 = vector.load %arg2[%c0_172, %c7_173, %c20_174] : memref<1x16x64xf32, #tpu.memory_space<vmem>>, vector<1x9x36xf32>
    %431 = vector.shape_cast %430 : vector<1x9x36xf32> to vector<9x36xf32>
    %432 = vector.extract_strided_slice %1 {offsets = [61, 0], sizes = [1, 36], strides = [1, 1]} : vector<64x36xf32> to vector<1x36xf32>
    %433 = vector.broadcast %432 : vector<1x36xf32> to vector<9x36xf32>
    %434 = arith.subf %431, %433 : vector<9x36xf32>
    %435 = math.absf %434 : vector<9x36xf32>
    %436 = arith.addf %429, %435 : vector<9x36xf32>
    %c0_175 = arith.constant 0 : index
    %c7_176 = arith.constant 7 : index
    %c24_177 = arith.constant 24 : index
    %437 = vector.load %arg2[%c0_175, %c7_176, %c24_177] : memref<1x16x64xf32, #tpu.memory_space<vmem>>, vector<1x9x36xf32>
    %438 = vector.shape_cast %437 : vector<1x9x36xf32> to vector<9x36xf32>
    %439 = vector.extract_strided_slice %1 {offsets = [62, 0], sizes = [1, 36], strides = [1, 1]} : vector<64x36xf32> to vector<1x36xf32>
    %440 = vector.broadcast %439 : vector<1x36xf32> to vector<9x36xf32>
    %441 = arith.subf %438, %440 : vector<9x36xf32>
    %442 = math.absf %441 : vector<9x36xf32>
    %443 = arith.addf %436, %442 : vector<9x36xf32>
    %c0_178 = arith.constant 0 : index
    %c7_179 = arith.constant 7 : index
    %c28_180 = arith.constant 28 : index
    %444 = vector.load %arg2[%c0_178, %c7_179, %c28_180] : memref<1x16x64xf32, #tpu.memory_space<vmem>>, vector<1x9x36xf32>
    %445 = vector.shape_cast %444 : vector<1x9x36xf32> to vector<9x36xf32>
    %446 = vector.extract_strided_slice %1 {offsets = [63, 0], sizes = [1, 36], strides = [1, 1]} : vector<64x36xf32> to vector<1x36xf32>
    %447 = vector.broadcast %446 : vector<1x36xf32> to vector<9x36xf32>
    %448 = arith.subf %445, %447 : vector<9x36xf32>
    %449 = math.absf %448 : vector<9x36xf32>
    %450 = arith.addf %443, %449 : vector<9x36xf32>
    %c0_181 = arith.constant 0 : index
    %c0_182 = arith.constant 0 : index
    %451 = vector.load %arg3[%c0_181, %c0_182] : memref<36x9xf32, #tpu.memory_space<vmem>>, vector<36x9xf32>
    %cst_183 = arith.constant dense<0.000000e+00> : vector<9x9xf32>
    %452 = tpu.matmul %450, %451, %cst_183 {dimension_numbers = #tpu.dot_dimension_numbers<[1], [0], [0], [1], [0, 0, 1, 1], [], []>} : vector<9x36xf32>, vector<36x9xf32>, vector<9x9xf32> -> vector<9x9xf32>
    %cst_184 = arith.constant dense<0x7F800000> : vector<9xf32>
    %453 = vector.multi_reduction <minimumf>, %452, %cst_184 [1] : vector<9x9xf32> to vector<9xf32>
    %454 = vector.shape_cast %453 : vector<9xf32> to vector<9x1xf32>
    %cst_185 = arith.constant dense<0x7F800000> : vector<1xf32>
    %455 = vector.multi_reduction <minimumf>, %454, %cst_185 [0] : vector<9x1xf32> to vector<1xf32>
    %456 = vector.shape_cast %455 : vector<1xf32> to vector<1x1xf32>
    %457 = tpu.iota {dimensions = array<i32: 0>} : vector<9x9xi32>
    %458 = tpu.iota {dimensions = array<i32: 1>} : vector<9x9xi32>
    %c9_i32 = arith.constant 9 : i32
    %459 = vector.broadcast %c9_i32 : i32 to vector<9x9xi32>
    %460 = arith.muli %457, %459 : vector<9x9xi32>
    %461 = arith.addi %460, %458 : vector<9x9xi32>
    %462 = arith.sitofp %461 : vector<9x9xi32> to vector<9x9xf32>
    %463 = vector.broadcast %456 : vector<1x1xf32> to vector<9x9xf32>
    %464 = arith.cmpf oeq, %452, %463 : vector<9x9xf32>
    %cst_186 = arith.constant 8.100000e+01 : f32
    %465 = vector.broadcast %cst_186 : f32 to vector<9x9xf32>
    %466 = arith.select %464, %462, %465 : vector<9x9xi1>, vector<9x9xf32>
    %cst_187 = arith.constant dense<0x7F800000> : vector<9xf32>
    %467 = vector.multi_reduction <minimumf>, %466, %cst_187 [1] : vector<9x9xf32> to vector<9xf32>
    %468 = vector.shape_cast %467 : vector<9xf32> to vector<9x1xf32>
    %cst_188 = arith.constant dense<0x7F800000> : vector<1xf32>
    %469 = vector.multi_reduction <minimumf>, %468, %cst_188 [0] : vector<9x1xf32> to vector<1xf32>
    %470 = vector.shape_cast %469 : vector<1xf32> to vector<1x1xf32>
    %471 = arith.fptosi %470 : vector<1x1xf32> to vector<1x1xi32>
    %c0_189 = arith.constant 0 : index
    %c0_190 = arith.constant 0 : index
    %c0_191 = arith.constant 0 : index
    %472 = vector.load %arg4[%c0_189, %c0_190, %c0_191] : memref<1x1x1xi32, #tpu.memory_space<vmem>>, vector<1x1x1xi32>
    %473 = vector.shape_cast %472 : vector<1x1x1xi32> to vector<1x1xi32>
    %474 = vector.shape_cast %471 : vector<1x1xi32> to vector<1x1x1xi32>
    tpu.vector_store %arg4[%c0_189, %c0_190, %c0_191], %474 {strides = array<i32>} : memref<1x1x1xi32, #tpu.memory_space<vmem>>, vector<1x1x1xi32>,
    %c0_192 = arith.constant 0 : index
    %c0_193 = arith.constant 0 : index
    %c0_194 = arith.constant 0 : index
    %475 = vector.load %arg5[%c0_192, %c0_193, %c0_194] : memref<1x1x1xf32, #tpu.memory_space<vmem>>, vector<1x1x1xf32>
    %476 = vector.shape_cast %475 : vector<1x1x1xf32> to vector<1x1xf32>
    %477 = vector.shape_cast %456 : vector<1x1xf32> to vector<1x1x1xf32>
    tpu.vector_store %arg5[%c0_192, %c0_193, %c0_194], %477 {strides = array<i32>} : memref<1x1x1xf32, #tpu.memory_space<vmem>>, vector<1x1x1xf32>,
    return
  }
  func.func @transform_0(%arg0: i32) -> (i32, i32, i32) {
    %c0_i32 = arith.constant 0 : i32
    %c0_i32_0 = arith.constant 0 : i32
    %c0_i32_1 = arith.constant 0 : i32
    return %arg0, %c0_i32, %c0_i32_0 : i32, i32, i32
  }
  func.func @transform_1(%arg0: i32) -> (i32, i32, i32) {
    %c0_i32 = arith.constant 0 : i32
    %c0_i32_0 = arith.constant 0 : i32
    %c0_i32_1 = arith.constant 0 : i32
    return %arg0, %c0_i32, %c0_i32_0 : i32, i32, i32
  }
  func.func @transform_2(%arg0: i32) -> (i32, i32) {
    %c0_i32 = arith.constant 0 : i32
    %c0_i32_0 = arith.constant 0 : i32
    %c0_i32_1 = arith.constant 0 : i32
    return %c0_i32, %c0_i32_0 : i32, i32
  }
  func.func @transform_3(%arg0: i32) -> (i32, i32, i32) {
    %c0_i32 = arith.constant 0 : i32
    %c0_i32_0 = arith.constant 0 : i32
    %c0_i32_1 = arith.constant 0 : i32
    return %arg0, %c0_i32, %c0_i32_0 : i32, i32, i32
  }
  func.func @transform_4(%arg0: i32) -> (i32, i32, i32) {
    %c0_i32 = arith.constant 0 : i32
    %c0_i32_0 = arith.constant 0 : i32
    %c0_i32_1 = arith.constant 0 : i32
    return %arg0, %c0_i32, %c0_i32_0 : i32, i32, i32
  }
}

</mosaic_0001>

<bundles_post_ra>
// kernel: tpu_custom_call.1
= control target key start
LH: loop header
LB: loop body
LE: loop exit
PB: predicated region body
PF: predicated region fallthrough
CT: control target
= control target key end

     0   :  { %s1902_s15 = smov 0   ;;  %s2554_s0 = inlined_call_operand.vmem [shape: f32[2,64,36], index: 0, kind: input, shape index: {}]   ;;  %s2555_s1 = inlined_call_operand.vmem [shape: f32[2,16,64], index: 1, kind: input, shape index: {}]   ;;  %s2556_s2 = inlined_call_operand.vmem [shape: f32[36,9], index: 2, kind: input, shape index: {}]   ;;  %s2557_s3 = inlined_call_operand.vmem [shape: s32[2,1,1], index: 3, kind: output, shape index: {0}]   ;;  %s2558_s4 = inlined_call_operand.vmem [shape: f32[2,1,1], index: 4, kind: output, shape index: {1}]  }
   0x1 LB: > { %s1784_s16 = sadd.s32 4294967295, %s1861_s15   ;;  %p1788_p0 = scmp.ge.s32.totalorder %s1861_s15, 1  ;;  %s1861_s15 = sphi %s1902_s15, %s15_s15  }
   0x2   : > { %p175_p1 = scmp.lt.s32.totalorder %s1861_s15, 3 }
   0x4   : > { %p176_p2 = pnand %p1788_p0, %p175_p1 }
   0x5   : > { %p207_p3 = scmp.lt.s32.totalorder (!%p176_p2), %s1784_s16, 1  ;;  %v233_v0 = vlaneseq (!%p176_p2)  ;;  %s1863_s21 = smov (!%p176_p2), 4   ;;  %vm1571_vm0 = vcmask (!%p176_p2), 1043456   ;;  %vm1564_vm1 = vcmask (!%p176_p2), 293888   ;;  %vm1654_vm2 = vcmask (!%p176_p2), 65536  }
   0x6   : > { %179 = sbr.rel (%p176_p2) target bundleno = 1057 (0x421), region = 32  ;;  %s1864_s22 = smov (!%p176_p2), 12   ;;  %vm1650_vm3 = vcmask (!%p176_p2), 72704   ;;  %vm1658_vm4 = vcmask (!%p176_p2), 1040384   ;;  %vm1697_vm5 = vcmask (!%p176_p2), 0  }
   0x7   : > { %v1913_v1 = vshrl.u32 (!%p176_p2), %v233_v0, 7  ;;  %s1865_s23 = smov (!%p176_p2), 8   ;;  %s1866_s24 = smov (!%p176_p2), 16  }
   0x8   : > { %s1867_s25 = smov (!%p176_p2), 20   ;;  %s1868_s26 = smov (!%p176_p2), 24  }
   0x9   : > { %v1917_v2 = vsub.s32 (!%p176_p2), 1, %v1913_v1  ;;  %v1920_v3 = vsub.s32 (!%p176_p2), 3, %v1913_v1  ;;  %v1928_v4 = vsub.s32 (!%p176_p2), 2, %v1913_v1  ;;  %v1931_v5 = vsub.s32 (!%p176_p2), 4, %v1913_v1  ;;  %s1869_s27 = smov (!%p176_p2), 28   ;;  %s1870_s6 = smov (!%p176_p2), 124  }
   0xa   : > { %v1947_v11 = vsub.s32 (!%p176_p2), 5, %v1913_v1  ;;  %v1950_v12 = vsub.s32 (!%p176_p2), 6, %v1913_v1  ;;  %v1959_v15 = vsub.s32 (!%p176_p2), 7, %v1913_v1  ;;  %s1871_s7 = smov (!%p176_p2), 116   ;;  %s1872_s8 = smov (!%p176_p2), 120  }
   0xb   : > { %s1873_s9 = smov (!%p176_p2), 112   ;;  %s1874_s10 = smov (!%p176_p2), 108  }
   0xc   : > { %s1875_s11 = smov (!%p176_p2), 104   ;;  %s1876_s12 = smov (!%p176_p2), 100  }
   0xd   : > { %s2560_s16 = smov (!%p207_p3, %s1784_s16), 1 }
   0xe   : > { %s1798_s17 = sshll.u32 %s2560_s16, 6  ;;  %s1799_s28 = sshll.u32 %s2560_s16, 4 }
   0xf   : > { %s1925_s20 = scalar_lea.vmem %s2554_s0, %s1798_s17  ;;  %s2075_s5 = scalar_lea.vmem %s2555_s1, %s1799_s28 }
  0x10   : > { %v1934_v6 = vld [vmem:[%s1925_s20] sm:$0xff]  ;;  %v1962_v16 = vld [vmem:[%s1925_s20 + $0x8] sm:$0xff]  ;;  %v1989_v25 = vld [vmem:[%s1925_s20 + $0x10] sm:$0xff]  ;;  %s219_s30 = scalar_lea.vmem %s2557_s3, %s2560_s16 }
  0x11   : > { %v246_v7 = vrot.slane %v1934_v6, %v1917_v2  ;;  %v290_v8 = vrot.slane %v1934_v6, %v1920_v3  ;;  %v268_v9 = vrot.slane %v1934_v6, %v1928_v4  ;;  %v312_v10 = vrot.slane %v1934_v6, %v1931_v5  ;;  %v2010_v32 = vld [vmem:[%s1925_s20 + $0x18] sm:$0xff]  ;;  %v227_v41 = vld [vmem:[%s1925_s20 + $0x20] sm:$0xff]  ;;  %v2050_v48 = vld [vmem:[%s1925_s20 + $0x28] sm:$0xff] }
  0x12   : > { %v334_v13 = vrot.slane %v1934_v6, %v1947_v11  ;;  %v356_v14 = vrot.slane %v1934_v6, %v1950_v12  ;;  %v378_v17 = vrot.slane %v1934_v6, %v1959_v15  ;;  %v412_v18 = vrot.slane %v1962_v16, %v1917_v2  ;;  %v2078_v55 = vld [vmem:[%s2075_s5] sm:$0xff]  ;;  %v2081_v56 = vld [vmem:[%s2075_s5 + $0x8] sm:$0x1] }
  0x13   : > { %248 = vrot.lane.b32.xlu0 %v246_v7, %s1863_s21  ;;  %292 = vrot.lane.b32.xlu1 %v290_v8, %s1864_s22  ;;  %v456_v19 = vrot.slane %v1962_v16, %v1920_v3  ;;  %v434_v20 = vrot.slane %v1962_v16, %v1928_v4  ;;  %v500_v21 = vrot.slane %v1962_v16, %v1947_v11 }
  0x14   : > { %v478_v22 = vrot.slane %v1962_v16, %v1931_v5  ;;  %v544_v23 = vrot.slane %v1962_v16, %v1959_v15  ;;  %v522_v24 = vrot.slane %v1962_v16, %v1950_v12  ;;  %v578_v26 = vrot.slane %v1989_v25, %v1917_v2 }
  0x15   : > { %v600_v27 = vrot.slane %v1989_v25, %v1928_v4  ;;  %v622_v28 = vrot.slane %v1989_v25, %v1920_v3  ;;  %v644_v29 = vrot.slane %v1989_v25, %v1931_v5  ;;  %v666_v30 = vrot.slane %v1989_v25, %v1947_v11 }
  0x16   : > { %v688_v31 = vrot.slane %v1989_v25, %v1950_v12  ;;  %v710_v33 = vrot.slane %v1989_v25, %v1959_v15  ;;  %v744_v34 = vrot.slane %v2010_v32, %v1917_v2  ;;  %v766_v35 = vrot.slane %v2010_v32, %v1928_v4 }
  0x17   : > { %270 = vrot.lane.b32.xlu0 %v268_v9, %s1865_s23  ;;  %314 = vrot.lane.b32.xlu1 %v312_v10, %s1866_s24  ;;  %v788_v36 = vrot.slane %v2010_v32, %v1920_v3  ;;  %v810_v37 = vrot.slane %v2010_v32, %v1931_v5  ;;  %v832_v38 = vrot.slane %v2010_v32, %v1947_v11 }
  0x18   : > { %v854_v39 = vrot.slane %v2010_v32, %v1950_v12  ;;  %v876_v40 = vrot.slane %v2010_v32, %v1959_v15  ;;  %v932_v42 = vrot.slane %v227_v41, %v1928_v4  ;;  %v910_v43 = vrot.slane %v227_v41, %v1917_v2 }
  0x19   : > { %v976_v44 = vrot.slane %v227_v41, %v1931_v5  ;;  %v954_v45 = vrot.slane %v227_v41, %v1920_v3  ;;  %v1020_v46 = vrot.slane %v227_v41, %v1950_v12  ;;  %v998_v47 = vrot.slane %v227_v41, %v1947_v11 }
  0x1a   : > { %v1042_v49 = vrot.slane %v227_v41, %v1959_v15  ;;  %v1098_v50 = vrot.slane %v2050_v48, %v1928_v4  ;;  %v1076_v51 = vrot.slane %v2050_v48, %v1917_v2  ;;  %v1142_v52 = vrot.slane %v2050_v48, %v1931_v5 }
  0x1b   : > { %336 = vrot.lane.b32.xlu0 %v334_v13, %s1867_s25  ;;  %358 = vrot.lane.b32.xlu1 %v356_v14, %s1868_s26  ;;  %v1120_v53 = vrot.slane %v2050_v48, %v1920_v3  ;;  %v1164_v54 = vrot.slane %v2050_v48, %v1947_v11 }
  0x1f   : > { %380 = vrot.lane.b32.xlu0 %v378_v17, %s1869_s27  ;;  %414 = vrot.lane.b32.xlu1 %v412_v18, %s1863_s21 }
  0x23   : > { %458 = vrot.lane.b32.xlu1 %v456_v19, %s1864_s22  ;;  %436 = vrot.lane.b32.xlu0 %v434_v20, %s1865_s23 }
  0x27   : > { %502 = vrot.lane.b32.xlu1 %v500_v21, %s1867_s25  ;;  %480 = vrot.lane.b32.xlu0 %v478_v22, %s1866_s24 }
  0x2b   : > { %546 = vrot.lane.b32.xlu1 %v544_v23, %s1869_s27  ;;  %524 = vrot.lane.b32.xlu0 %v522_v24, %s1868_s26 }
  0x2f   : > { %580 = vrot.lane.b32.xlu0 %v578_v26, %s1863_s21  ;;  %602 = vrot.lane.b32.xlu1 %v600_v27, %s1865_s23 }
  0x33   : > { %624 = vrot.lane.b32.xlu0 %v622_v28, %s1864_s22  ;;  %646 = vrot.lane.b32.xlu1 %v644_v29, %s1866_s24 }
  0x37   : > { %668 = vrot.lane.b32.xlu0 %v666_v30, %s1867_s25  ;;  %690 = vrot.lane.b32.xlu1 %v688_v31, %s1868_s26 }
  0x3b   : > { %712 = vrot.lane.b32.xlu0 %v710_v33, %s1869_s27  ;;  %746 = vrot.lane.b32.xlu1 %v744_v34, %s1863_s21 }
  0x3f   : > { %768 = vrot.lane.b32.xlu0 %v766_v35, %s1865_s23  ;;  %790 = vrot.lane.b32.xlu1 %v788_v36, %s1864_s22 }
  0x43   : > { %812 = vrot.lane.b32.xlu0 %v810_v37, %s1866_s24  ;;  %834 = vrot.lane.b32.xlu1 %v832_v38, %s1867_s25 }
  0x47   : > { %856 = vrot.lane.b32.xlu0 %v854_v39, %s1868_s26  ;;  %878 = vrot.lane.b32.xlu1 %v876_v40, %s1869_s27  ;;  %v2107_v39 = vld [vmem:[%s2075_s5 + $0x1] sm:$0xff]  ;;  %v2110_v40 = vld [vmem:[%s2075_s5 + $0x9] sm:$0x1] }
  0x4b   : > { %934 = vrot.lane.b32.xlu0 %v932_v42, %s1865_s23  ;;  %912 = vrot.lane.b32.xlu1 %v910_v43, %s1863_s21 }
  0x4f   : > { %978 = vrot.lane.b32.xlu0 %v976_v44, %s1866_s24  ;;  %956 = vrot.lane.b32.xlu1 %v954_v45, %s1864_s22 }
  0x53   : > { %1022 = vrot.lane.b32.xlu0 %v1020_v46, %s1868_s26  ;;  %1000 = vrot.lane.b32.xlu1 %v998_v47, %s1867_s25 }
  0x57   : > { %1044 = vrot.lane.b32.xlu0 %v1042_v49, %s1869_s27  ;;  %1100 = vrot.lane.b32.xlu1 %v1098_v50, %s1865_s23 }
  0x5b   : > { %1078 = vrot.lane.b32.xlu0 %v1076_v51, %s1863_s21  ;;  %1144 = vrot.lane.b32.xlu1 %v1142_v52, %s1866_s24 }
  0x5f   : > { %1122 = vrot.lane.b32.xlu0 %v1120_v53, %s1864_s22 }
  0x63   : > { %1166 = vrot.lane.b32.xlu0 %v1164_v54, %s1867_s25 }
  0x85   : > { %v249_v57 = vpop.permute.xlu0 %248  ;;  %v293_v58 = vpop.permute.xlu1 %292 }
  0x86   : > { %v251_v59 = vsub.f32 %v2078_v55, %v249_v57  ;;  %v252_v60 = vsub.f32 %v2081_v56, %v249_v57  ;;  %v295_v61 = vsub.f32 %v2078_v55, %v293_v58  ;;  %v296_v14 = vsub.f32 %v2081_v56, %v293_v58 }
  0x88   : > { %v254_v62 = vand.u32 2147483647, %v252_v60  ;;  %v253_v63 = vand.u32 2147483647, %v251_v59  ;;  %v297_v10 = vand.u32 2147483647, %v295_v61 }
  0x89   : > { %v271_v7 = vpop.permute.xlu0 %270  ;;  %v315_v13 = vpop.permute.xlu1 %314  ;;  %v298_v22 = vand.u32 2147483647, %v296_v14 }
  0x8a   : > { %v273_v8 = vsub.f32 %v2078_v55, %v271_v7  ;;  %v274_v9 = vsub.f32 %v2081_v56, %v271_v7  ;;  %259 = vrot.lane.b32.xlu1 %v254_v62, %s1870_s6  ;;  %257 = vrot.lane.b32.xlu0 %v253_v63, %s1870_s6  ;;  %v317_v19 = vsub.f32 %v2078_v55, %v315_v13 }
  0x8b   : > { %v318_v23 = vsub.f32 %v2081_v56, %v315_v13 }
  0x8c   : > { %v275_v17 = vand.u32 2147483647, %v273_v8  ;;  %v276_v21 = vand.u32 2147483647, %v274_v9  ;;  %v319_v24 = vand.u32 2147483647, %v317_v19 }
  0x8d   : > { %v337_v18 = vpop.permute.xlu0 %336  ;;  %v359_v27 = vpop.permute.xlu1 %358  ;;  %v320_v33 = vand.u32 2147483647, %v318_v23 }
  0x8e   : > { %301 = vrot.lane.b32.xlu1 %v297_v10, %s1871_s7  ;;  %279 = vrot.lane.b32.xlu0 %v275_v17, %s1872_s8  ;;  %v339_v20 = vsub.f32 %v2078_v55, %v337_v18  ;;  %v340_v29 = vsub.f32 %v2081_v56, %v337_v18  ;;  %v361_v30 = vsub.f32 %v2078_v55, %v359_v27 }
  0x8f   : > { %v362_v36 = vsub.f32 %v2081_v56, %v359_v27 }
  0x90   : > { %v341_v26 = vand.u32 2147483647, %v339_v20  ;;  %v342_v34 = vand.u32 2147483647, %v340_v29  ;;  %v363_v37 = vand.u32 2147483647, %v361_v30 }
  0x91   : > { %v381_v28 = vpop.permute.xlu0 %380  ;;  %v415_v35 = vpop.permute.xlu1 %414  ;;  %v364_v44 = vand.u32 2147483647, %v362_v36  ;;  %v2145_v29 = vld [vmem:[%s2075_s5 + $0x2] sm:$0xff] }
  0x92   : > { %303 = vrot.lane.b32.xlu1 %v298_v22, %s1871_s7  ;;  %281 = vrot.lane.b32.xlu0 %v276_v21, %s1872_s8  ;;  %v383_v31 = vsub.f32 %v2078_v55, %v381_v28  ;;  %v384_v41 = vsub.f32 %v2081_v56, %v381_v28  ;;  %v417_v42 = vsub.f32 %v2107_v39, %v415_v35 }
  0x93   : > { %v418_v43 = vsub.f32 %v2110_v40, %v415_v35 }
  0x94   : > { %v385_v38 = vand.u32 2147483647, %v383_v31  ;;  %v386_v47 = vand.u32 2147483647, %v384_v41  ;;  %v419_v52 = vand.u32 2147483647, %v417_v42  ;;  %v1186_v41 = vrot.slane %v2050_v48, %v1950_v12 }
  0x95   : > { %v437_v45 = vpop.permute.xlu0 %436  ;;  %v459_v46 = vpop.permute.xlu1 %458  ;;  %v420_v51 = vand.u32 2147483647, %v418_v43  ;;  %v2159_v43 = vld [vmem:[%s2075_s5 + $0xa] sm:$0x1] }
  0x96   : > { %323 = vrot.lane.b32.xlu0 %v319_v24, %s1873_s9  ;;  %345 = vrot.lane.b32.xlu1 %v341_v26, %s1874_s10  ;;  %v461_v49 = vsub.f32 %v2107_v39, %v459_v46  ;;  %v439_v50 = vsub.f32 %v2107_v39, %v437_v45  ;;  %v462_v54 = vsub.f32 %v2110_v40, %v459_v46 }
  0x97   : > { %v440_v61 = vsub.f32 %v2110_v40, %v437_v45 }
  0x98   : > { %v463_v57 = vand.u32 2147483647, %v461_v49  ;;  %v441_v58 = vand.u32 2147483647, %v439_v50  ;;  %v464_v7 = vand.u32 2147483647, %v462_v54  ;;  %v1208_v49 = vrot.slane %v2050_v48, %v1959_v15 }
  0x99   : > { %v481_v53 = vpop.permute.xlu0 %480  ;;  %v503_v60 = vpop.permute.xlu1 %502  ;;  %v442_v9 = vand.u32 2147483647, %v440_v61 }
  0x9a   : > { %325 = vrot.lane.b32.xlu0 %v320_v33, %s1873_s9  ;;  %347 = vrot.lane.b32.xlu1 %v342_v34, %s1874_s10  ;;  %v505_v62 = vsub.f32 %v2107_v39, %v503_v60  ;;  %v483_v63 = vsub.f32 %v2107_v39, %v481_v53  ;;  %v506_v10 = vsub.f32 %v2110_v40, %v503_v60 }
  0x9b   : > { %v484_v19 = vsub.f32 %v2110_v40, %v481_v53  ;;  %v229_v53 = vld [vmem:[%s1925_s20 + $0x30] sm:$0xff] }
  0x9c   : > { %v507_v13 = vand.u32 2147483647, %v505_v62  ;;  %v485_v14 = vand.u32 2147483647, %v483_v63  ;;  %v508_v22 = vand.u32 2147483647, %v506_v10  ;;  %v1264_v60 = vrot.slane %v229_v53, %v1928_v4 }
  0x9d   : > { %v525_v59 = vpop.permute.xlu0 %524  ;;  %v547_v18 = vpop.permute.xlu1 %546  ;;  %v486_v23 = vand.u32 2147483647, %v484_v19  ;;  %v1308_v19 = vrot.slane %v229_v53, %v1931_v5 }
  0x9e   : > { %367 = vrot.lane.b32.xlu0 %v363_v37, %s1875_s11  ;;  %389 = vrot.lane.b32.xlu1 %v385_v38, %s1876_s12  ;;  %v549_v20 = vsub.f32 %v2107_v39, %v547_v18  ;;  %v527_v21 = vsub.f32 %v2107_v39, %v525_v59  ;;  %v550_v26 = vsub.f32 %v2110_v40, %v547_v18 }
  0x9f   : > { %v528_v30 = vsub.f32 %v2110_v40, %v525_v59 }
  0xa0   : > { %v551_v27 = vand.u32 2147483647, %v549_v20  ;;  %v529_v28 = vand.u32 2147483647, %v527_v21  ;;  %v552_v34 = vand.u32 2147483647, %v550_v26  ;;  %v1286_v20 = vrot.slane %v229_v53, %v1920_v3 }
  0xa1   : > { %v581_v8 = vpop.permute.xlu0 %580  ;;  %v603_v31 = vpop.permute.xlu1 %602  ;;  %v530_v36 = vand.u32 2147483647, %v528_v30 }
  0xa2   : > { %369 = vrot.lane.b32.xlu0 %v364_v44, %s1875_s11  ;;  %391 = vrot.lane.b32.xlu1 %v386_v47, %s1876_s12  ;;  %v583_v33 = vsub.f32 %v2145_v29, %v581_v8  ;;  %v605_v38 = vsub.f32 %v2145_v29, %v603_v31  ;;  %v584_v46 = vsub.f32 %v2159_v43, %v581_v8 }
  0xa3   : > { %v606_v47 = vsub.f32 %v2159_v43, %v603_v31 }
  0xa4   : > { %v585_v42 = vand.u32 2147483647, %v583_v33  ;;  %v607_v50 = vand.u32 2147483647, %v605_v38 }
  0xa5   : > { %v2132_v17 = vpop.permute.xlu0 %624  ;;  %v647_v37 = vpop.permute.xlu1 %646 }
  0xa6   : > { %425 = vrot.lane.b32.xlu0 %v420_v51, %s1870_s6  ;;  %423 = vrot.lane.b32.xlu1 %v419_v52, %s1870_s6  ;;  %v586_v51 = vand.u32 2147483647, %v584_v46  ;;  %v608_v52 = vand.u32 2147483647, %v606_v47  ;;  %v627_v59 = vsub.f32 %v2145_v29, %v2132_v17  ;;  %v649_v48 = vsub.f32 %v2145_v29, %v647_v37 }
  0xa7   : > { %v650_v63 = vsub.f32 %v2159_v43, %v647_v37  ;;  %v1330_v37 = vrot.slane %v229_v53, %v1947_v11  ;;  %v1374_v46 = vrot.slane %v229_v53, %v1959_v15 }
  0xa8   : > { %v629_v8 = vand.u32 2147483647, %v627_v59  ;;  %v2250_v59 = vld [vmem:[%s1925_s20 + $0x38] sm:$0xff] }
  0xa9   : > { %v2139_v24 = vpop.permute.xlu0 %668  ;;  %v691_v44 = vpop.permute.xlu1 %690  ;;  %v652_v10 = vand.u32 2147483647, %v650_v63 }
  0xaa   : > { %467 = vrot.lane.b32.xlu0 %v463_v57, %s1871_s7  ;;  %445 = vrot.lane.b32.xlu1 %v441_v58, %s1872_s8  ;;  %v1242_v58 = vrot.slane %v229_v53, %v1917_v2  ;;  %v693_v21 = vsub.f32 %v2145_v29, %v691_v44  ;;  %v672_v26 = vsub.f32 %v2159_v43, %v2139_v24 }
  0xad   : > { %v2151_v35 = vpop.permute.xlu0 %712  ;;  %v2172_v54 = vpop.permute.xlu1 %746 }
  0xae   : > { %469 = vrot.lane.b32.xlu0 %v464_v7, %s1871_s7  ;;  %447 = vrot.lane.b32.xlu1 %v442_v9, %s1872_s8  ;;  %v651_v7 = vand.u32 2147483647, %v649_v48  ;;  %v628_v9 = vsub.f32 %v2159_v43, %v2132_v17  ;;  %v671_v17 = vsub.f32 %v2145_v29, %v2139_v24  ;;  %v1352_v24 = vrot.slane %v229_v53, %v1950_v12 }
  0xaf   : > { %v715_v38 = vsub.f32 %v2145_v29, %v2151_v35  ;;  %v716_v47 = vsub.f32 %v2159_v43, %v2151_v35 }
  0xb0   : > { %v630_v18 = vand.u32 2147483647, %v628_v9  ;;  %v673_v30 = vand.u32 2147483647, %v671_v17 }
  0xb1   : > { %v2161_v45 = vpop.permute.xlu0 %768  ;;  %v2183_v61 = vpop.permute.xlu1 %790  ;;  %v718_v48 = vand.u32 2147483647, %v716_v47 }
  0xb2   : > { %511 = vrot.lane.b32.xlu0 %v507_v13, %s1874_s10  ;;  %489 = vrot.lane.b32.xlu1 %v485_v14, %s1873_s9 }
  0xb5   : > { %v2174_v57 = vpop.permute.xlu0 %812  ;;  %v2194_v13 = vpop.permute.xlu1 %834 }
  0xb6   : > { %513 = vrot.lane.b32.xlu0 %v508_v22, %s1874_s10  ;;  %491 = vrot.lane.b32.xlu1 %v486_v23, %s1873_s9 }
  0xb9   : > { %v2185_v62 = vpop.permute.xlu0 %856  ;;  %v2205_v22 = vpop.permute.xlu1 %878 }
  0xba   : > { %555 = vrot.lane.b32.xlu0 %v551_v27, %s1876_s12  ;;  %533 = vrot.lane.b32.xlu1 %v529_v28, %s1875_s11  ;;  %v694_v27 = vsub.f32 %v2159_v43, %v691_v44  ;;  %v695_v28 = vand.u32 2147483647, %v693_v21  ;;  %v2231_v44 = vld [vmem:[%s2075_s5 + $0xb] sm:$0x1] }
  0xbd   : > { %v2196_v14 = vpop.permute.xlu0 %934  ;;  %v2216_v31 = vpop.permute.xlu1 %912 }
  0xbe   : > { %557 = vrot.lane.b32.xlu0 %v552_v34, %s1876_s12  ;;  %535 = vrot.lane.b32.xlu1 %v530_v36, %s1875_s11  ;;  %v696_v34 = vand.u32 2147483647, %v694_v27  ;;  %v674_v36 = vand.u32 2147483647, %v672_v26 }
  0xc1   : > { %v2207_v23 = vpop.permute.xlu0 %978 }
  0xc2   : > { %1188 = vrot.lane.b32.xlu1 %v1186_v41, %s1868_s26  ;;  %589 = vrot.lane.b32.xlu0 %v585_v42, %s1870_s6  ;;  %v2226_v41 = vpop.permute.xlu1 %956 }
  0xc5   : > { %v2218_v33 = vpop.permute.xlu0 %1022 }
  0xc6   : > { %1210 = vrot.lane.b32.xlu1 %v1208_v49, %s1869_s27  ;;  %611 = vrot.lane.b32.xlu0 %v607_v50, %s1872_s8  ;;  %v750_v49 = vsub.f32 %v2231_v44, %v2172_v54  ;;  %v717_v50 = vand.u32 2147483647, %v715_v38 }
  0xc8   : > { %v752_v35 = vand.u32 2147483647, %v750_v49 }
  0xc9   : > { %v2228_v42 = vpop.permute.xlu0 %1044 }
  0xca   : > { %591 = vrot.lane.b32.xlu1 %v586_v51, %s1870_s6  ;;  %613 = vrot.lane.b32.xlu0 %v608_v52, %s1872_s8  ;;  %v2241_v51 = vld [vmem:[%s2075_s5 + $0x3] sm:$0xff]  ;;  %v2245_v52 = vpop.permute.xlu1 %1000 }
  0xcb   : > { %v749_v53 = vsub.f32 %v2241_v51, %v2172_v54  ;;  %v771_v63 = vsub.f32 %v2241_v51, %v2161_v45  ;;  %v2269_v54 = vsub.s32 0, %v1913_v1 }
  0xcd   : > { %v236_v26 = vrot.slane %v1934_v6, %v2269_v54  ;;  %v837_v6 = vsub.f32 %v2241_v51, %v2194_v13 }
  0xce   : > { %1244 = vrot.lane.b32.xlu1 %v1242_v58, %s1863_s21  ;;  %1266 = vrot.lane.b32.xlu0 %v1264_v60, %s1865_s23  ;;  %v2247_v58 = vpop.permute.xlu0 %1078  ;;  %v1408_v60 = vrot.slane %v2250_v59, %v1917_v2  ;;  %v2262_v9 = vpop.permute.xlu1 %1100  ;;  %v772_v2 = vsub.f32 %v2231_v44, %v2161_v45  ;;  %v1452_v45 = vrot.slane %v2250_v59, %v1920_v3 }
  0xd2   : > { %655 = vrot.lane.b32.xlu0 %v651_v7, %s1873_s9  ;;  %633 = vrot.lane.b32.xlu1 %v629_v8, %s1871_s7  ;;  %v793_v7 = vsub.f32 %v2241_v51, %v2183_v61  ;;  %v751_v8 = vand.u32 2147483647, %v749_v53  ;;  %v2277_v17 = vpop.permute.xlu1 %1144 }
  0xd6   : > { %657 = vrot.lane.b32.xlu0 %v652_v10, %s1873_s9  ;;  %635 = vrot.lane.b32.xlu1 %v630_v18, %s1871_s7  ;;  %v2264_v10 = vpop.permute.xlu0 %1122  ;;  %v794_v18 = vsub.f32 %v2231_v44, %v2183_v61  ;;  %v1430_v61 = vrot.slane %v2250_v59, %v1928_v4  ;;  %v816_v4 = vsub.f32 %v2231_v44, %v2174_v57 }
  0xd8   : > { %v796_v27 = vand.u32 2147483647, %v794_v18 }
  0xda   : > { %1310 = vrot.lane.b32.xlu0 %v1308_v19, %s1866_s24  ;;  %1288 = vrot.lane.b32.xlu1 %v1286_v20, %s1864_s22  ;;  %v795_v19 = vand.u32 2147483647, %v793_v7  ;;  %v773_v20 = vand.u32 2147483647, %v771_v63  ;;  %v2279_v21 = vpop.permute.xlu0 %1166 }
  0xde   : > { %699 = vrot.lane.b32.xlu0 %v695_v28, %s1875_s11  ;;  %677 = vrot.lane.b32.xlu1 %v673_v30, %s1874_s10  ;;  %v774_v28 = vand.u32 2147483647, %v772_v2  ;;  %v237_v30 = vsub.f32 %v2078_v55, %v236_v26  ;;  %v838_v55 = vsub.f32 %v2231_v44, %v2194_v13  ;;  %v1474_v13 = vrot.slane %v2250_v59, %v1931_v5 }
  0xdf   : > { %v881_v2 = vsub.f32 %v2241_v51, %v2205_v22 }
  0xe0   : > { %v239_v3 = vand.u32 2147483647, %v237_v30 }
  0xe2   : > { %701 = vrot.lane.b32.xlu0 %v696_v34, %s1875_s11  ;;  %679 = vrot.lane.b32.xlu1 %v674_v36, %s1874_s10  ;;  %v815_v34 = vsub.f32 %v2241_v51, %v2174_v57  ;;  %v1496_v57 = vrot.slane %v2250_v59, %v1947_v11  ;;  %v860_v11 = vsub.f32 %v2231_v44, %v2185_v62 }
  0xe4   : > { %v817_v38 = vand.u32 2147483647, %v815_v34 }
  0xe6   : > { %1354 = vrot.lane.b32.xlu0 %v1352_v24, %s1868_s26  ;;  %1332 = vrot.lane.b32.xlu1 %v1330_v37, %s1867_s25  ;;  %v238_v37 = vsub.f32 %v2081_v56, %v236_v26 }
  0xea   : > { %1376 = vrot.lane.b32.xlu0 %v1374_v46, %s1869_s27  ;;  %721 = vrot.lane.b32.xlu1 %v717_v50, %s1876_s12  ;;  %v839_v46 = vand.u32 2147483647, %v837_v6  ;;  %v240_v50 = vand.u32 2147483647, %v238_v37  ;;  %v2322_v6 = vld [vmem:[%s2075_s5 + $0x4] sm:$0xff] }
  0xee   : > { %757 = vrot.lane.b32.xlu0 %v752_v35, %s1870_s6  ;;  %723 = vrot.lane.b32.xlu1 %v718_v48, %s1876_s12  ;;  %v818_v35 = vand.u32 2147483647, %v816_v4  ;;  %v840_v48 = vand.u32 2147483647, %v838_v55 }
  0xf2   : > { %1410 = vrot.lane.b32.xlu0 %v1408_v60, %s1863_s21  ;;  %755 = vrot.lane.b32.xlu1 %v751_v8, %s1870_s6  ;;  %v859_v8 = vsub.f32 %v2241_v51, %v2185_v62 }
  0xf6   : > { %799 = vrot.lane.b32.xlu0 %v795_v19, %s1871_s7  ;;  %777 = vrot.lane.b32.xlu1 %v773_v20, %s1872_s8 }
  0xfa   : > { %801 = vrot.lane.b32.xlu0 %v796_v27, %s1871_s7  ;;  %779 = vrot.lane.b32.xlu1 %v774_v28, %s1872_s8  ;;  %v402_v27 = vrot.slane %v1962_v16, %v2269_v54  ;;  %v861_v28 = vand.u32 2147483647, %v859_v8 }
  0xfc   : > { %v260_v36 = vpop.permute.xlu1 %259  ;;  %v258_v24 = vpop.permute.xlu0 %257  ;;  %v403_v16 = vsub.f32 %v2107_v39, %v402_v27  ;;  %v1518_v39 = vrot.slane %v2250_v59, %v1950_v12  ;;  %v1540_v12 = vrot.slane %v2250_v59, %v1959_v15  ;;  %v981_v15 = vsub.f32 %v2322_v6, %v2207_v23 }
  0xfd   : > { %v263_v53 = vadd.f32 %v258_v24, %v239_v3  ;;  %v264_v7 = vadd.f32 %v260_v36, %v240_v50  ;;  %v862_v3 = vand.u32 2147483647, %v860_v11 }
  0xfe   : > { %1454 = vrot.lane.b32.xlu0 %v1452_v45, %s1864_s22  ;;  %1432 = vrot.lane.b32.xlu1 %v1430_v61, %s1865_s23  ;;  %v882_v45 = vsub.f32 %v2231_v44, %v2205_v22  ;;  %v883_v61 = vand.u32 2147483647, %v881_v2  ;;  %v915_v22 = vsub.f32 %v2322_v6, %v2216_v31  ;;  %v405_v55 = vand.u32 2147483647, %v403_v16 }
  0xff   : > { %v959_v2 = vsub.f32 %v2322_v6, %v2226_v41 }
 0x100   : > { %v302_v47 = vpop.permute.xlu1 %301  ;;  %v280_v49 = vpop.permute.xlu0 %279  ;;  %v884_v62 = vand.u32 2147483647, %v882_v45 }
 0x101   : > { %v285_v63 = vadd.f32 %v280_v49, %v263_v53  ;;  %v937_v53 = vsub.f32 %v2322_v6, %v2196_v14 }
 0x102   : > { %843 = vrot.lane.b32.xlu0 %v839_v46, %s1874_s10  ;;  %821 = vrot.lane.b32.xlu1 %v817_v38, %s1873_s9 }
 0x103   : > { %v307_v20 = vadd.f32 %v302_v47, %v285_v63  ;;  %v404_v47 = vsub.f32 %v2110_v40, %v402_v27 }
 0x104   : > { %v304_v56 = vpop.permute.xlu1 %303  ;;  %v282_v60 = vpop.permute.xlu0 %281 }
 0x105   : > { %v286_v26 = vadd.f32 %v282_v60, %v264_v7  ;;  %v2337_v60 = vld [vmem:[%s2075_s5 + $0xc] sm:$0x1]  ;;  %v939_v7 = vand.u32 2147483647, %v937_v53 }
 0x106   : > { %845 = vrot.lane.b32.xlu0 %v840_v48, %s1874_s10  ;;  %823 = vrot.lane.b32.xlu1 %v818_v35, %s1873_s9  ;;  %v917_v35 = vand.u32 2147483647, %v915_v22  ;;  %v916_v8 = vsub.f32 %v2337_v60, %v2216_v31 }
 0x107   : > { %v308_v36 = vadd.f32 %v304_v56, %v286_v26  ;;  %v938_v26 = vsub.f32 %v2337_v60, %v2196_v14  ;;  %v1003_v14 = vsub.f32 %v2322_v6, %v2245_v52 }
 0x108   : > { %v346_v18 = vpop.permute.xlu1 %345  ;;  %v324_v19 = vpop.permute.xlu0 %323  ;;  %v918_v27 = vand.u32 2147483647, %v916_v8 }
 0x109   : > { %v329_v5 = vadd.f32 %v324_v19, %v307_v20  ;;  %v940_v45 = vand.u32 2147483647, %v938_v26  ;;  %v1005_v22 = vand.u32 2147483647, %v1003_v14 }
 0x10a   : > { %1498 = vrot.lane.b32.xlu0 %v1496_v57, %s1867_s25  ;;  %1476 = vrot.lane.b32.xlu1 %v1474_v13, %s1866_s24  ;;  %v406_v57 = vand.u32 2147483647, %v404_v47 }
 0x10b   : > { %v351_v24 = vadd.f32 %v346_v18, %v329_v5  ;;  %v961_v5 = vand.u32 2147483647, %v959_v2 }
 0x10c   : > { %v348_v30 = vpop.permute.xlu1 %347  ;;  %v326_v34 = vpop.permute.xlu0 %325 }
 0x10d   : > { %v330_v37 = vadd.f32 %v326_v34, %v308_v36 }
 0x10e   : > { %887 = vrot.lane.b32.xlu0 %v883_v61, %s1876_s12  ;;  %865 = vrot.lane.b32.xlu1 %v861_v28, %s1875_s11  ;;  %v983_v61 = vand.u32 2147483647, %v981_v15 }
 0x10f   : > { %v352_v49 = vadd.f32 %v348_v30, %v330_v37  ;;  %v960_v30 = vsub.f32 %v2337_v60, %v2226_v41  ;;  %v982_v37 = vsub.f32 %v2337_v60, %v2207_v23 }
 0x110   : > { %v390_v4 = vpop.permute.xlu1 %389  ;;  %v368_v38 = vpop.permute.xlu0 %367 }
 0x111   : > { %v373_v46 = vadd.f32 %v368_v38, %v351_v24 }
 0x112   : > { %889 = vrot.lane.b32.xlu0 %v884_v62, %s1876_s12  ;;  %867 = vrot.lane.b32.xlu1 %v862_v3, %s1875_s11  ;;  %v1025_v3 = vsub.f32 %v2322_v6, %v2218_v33  ;;  %v962_v62 = vand.u32 2147483647, %v960_v30 }
 0x113   : > { %v395_v50 = vadd.f32 %v390_v4, %v373_v46  ;;  %v568_v46 = vrot.slane %v1989_v25, %v2269_v54  ;;  %v2377_v25 = vld [vmem:[%s2075_s5 + $0x5] sm:$0xff] }
 0x114   : > { %v392_v48 = vpop.permute.xlu1 %391  ;;  %v370_v56 = vpop.permute.xlu0 %369  ;;  %v1027_v23 = vand.u32 2147483647, %v1025_v3 }
 0x115   : > { %v407_v63 = vadd.f32 %v405_v55, %v395_v50  ;;  %v374_v40 = vadd.f32 %v370_v56, %v352_v49  ;;  %v1047_v49 = vsub.f32 %v2322_v6, %v2228_v42  ;;  %v1004_v50 = vsub.f32 %v2337_v60, %v2245_v52 }
 0x116   : > { %921 = vrot.lane.b32.xlu0 %v917_v35, %s1870_s6  ;;  %1520 = vrot.lane.b32.xlu1 %v1518_v39, %s1868_s26  ;;  %v984_v39 = vand.u32 2147483647, %v982_v37  ;;  %v569_v56 = vsub.f32 %v2145_v29, %v568_v46  ;;  %v1081_v52 = vsub.f32 %v2377_v25, %v2247_v58 }
 0x117   : > { %v396_v13 = vadd.f32 %v392_v48, %v374_v40  ;;  %v1026_v40 = vsub.f32 %v2337_v60, %v2218_v33  ;;  %v1048_v33 = vsub.f32 %v2337_v60, %v2228_v42 }
 0x118   : > { %v424_v18 = vpop.permute.xlu1 %423  ;;  %v426_v19 = vpop.permute.xlu0 %425  ;;  %v571_v29 = vand.u32 2147483647, %v569_v56  ;;  %v1083_v15 = vand.u32 2147483647, %v1081_v52  ;;  %v2422_v52 = vld [vmem:[%s2075_s5 + $0x6] sm:$0xff] }
 0x119   : > { %v408_v20 = vadd.f32 %v406_v57, %v396_v13  ;;  %v429_v28 = vadd.f32 %v424_v18, %v407_v63  ;;  %v1006_v13 = vand.u32 2147483647, %v1004_v50  ;;  %v570_v18 = vsub.f32 %v2159_v43, %v568_v46 }
 0x11a   : > { %1542 = vrot.lane.b32.xlu1 %v1540_v12, %s1869_s27  ;;  %943 = vrot.lane.b32.xlu0 %v939_v7, %s1872_s8  ;;  %v1049_v12 = vand.u32 2147483647, %v1047_v49  ;;  %v1028_v26 = vand.u32 2147483647, %v1026_v40  ;;  %v1050_v30 = vand.u32 2147483647, %v1048_v33  ;;  %v1169_v46 = vsub.f32 %v2377_v25, %v2279_v21  ;;  %s222_s27 = scalar_lea.vmem %s2558_s4, %s2560_s16 }
 0x11b   : > { %v430_v24 = vadd.f32 %v426_v19, %v408_v20  ;;  %v572_v43 = vand.u32 2147483647, %v570_v18 }
 0x11c   : > { %v446_v11 = vpop.permute.xlu1 %445  ;;  %v468_v31 = vpop.permute.xlu0 %467  ;;  %v1171_v49 = vand.u32 2147483647, %v1169_v46 }
 0x11d   : > { %v451_v16 = vadd.f32 %v446_v11, %v429_v28 }
 0x11e   : > { %923 = vrot.lane.b32.xlu1 %v918_v27, %s1870_s6  ;;  %965 = vrot.lane.b32.xlu0 %v961_v5, %s1871_s7  ;;  %v1103_v27 = vsub.f32 %v2377_v25, %v2262_v9 }
 0x11f   : > { %v473_v38 = vadd.f32 %v468_v31, %v451_v16 }
 0x120   : > { %v448_v34 = vpop.permute.xlu1 %447  ;;  %v470_v36 = vpop.permute.xlu0 %469  ;;  %v1105_v14 = vand.u32 2147483647, %v1103_v27 }
 0x121   : > { %v452_v55 = vadd.f32 %v448_v34, %v430_v24  ;;  %v1125_v34 = vsub.f32 %v2377_v25, %v2264_v10 }
 0x122   : > { %945 = vrot.lane.b32.xlu1 %v940_v45, %s1872_s8  ;;  %987 = vrot.lane.b32.xlu0 %v983_v61, %s1873_s9  ;;  %v2393_v45 = vld [vmem:[%s2075_s5 + $0xd] sm:$0x1] }
 0x123   : > { %v474_v48 = vadd.f32 %v470_v36, %v452_v55  ;;  %v1082_v42 = vsub.f32 %v2393_v45, %v2247_v58  ;;  %v1104_v3 = vsub.f32 %v2393_v45, %v2262_v9 }
 0x124   : > { %v490_v41 = vpop.permute.xlu1 %489  ;;  %v512_v4 = vpop.permute.xlu0 %511 }
 0x125   : > { %v495_v47 = vadd.f32 %v490_v41, %v473_v38  ;;  %v1084_v37 = vand.u32 2147483647, %v1082_v42  ;;  %v1126_v38 = vsub.f32 %v2393_v45, %v2264_v10 }
 0x126   : > { %967 = vrot.lane.b32.xlu1 %v962_v62, %s1871_s7  ;;  %1009 = vrot.lane.b32.xlu0 %v1005_v22, %s1874_s10  ;;  %v1127_v62 = vand.u32 2147483647, %v1125_v34  ;;  %v1147_v22 = vsub.f32 %v2377_v25, %v2277_v17 }
 0x127   : > { %v517_v63 = vadd.f32 %v512_v4, %v495_v47  ;;  %v1106_v4 = vand.u32 2147483647, %v1104_v3 }
 0x128   : > { %v492_v53 = vpop.permute.xlu1 %491  ;;  %v514_v35 = vpop.permute.xlu0 %513  ;;  %v1149_v55 = vand.u32 2147483647, %v1147_v22 }
 0x129   : > { %v496_v57 = vadd.f32 %v492_v53, %v474_v48 }
 0x12a   : > { %989 = vrot.lane.b32.xlu1 %v984_v39, %s1873_s9  ;;  %1031 = vrot.lane.b32.xlu0 %v1027_v23, %s1875_s11  ;;  %v1128_v39 = vand.u32 2147483647, %v1126_v38  ;;  %v1148_v23 = vsub.f32 %v2393_v45, %v2277_v17 }
 0x12b   : > { %v518_v19 = vadd.f32 %v514_v35, %v496_v57  ;;  %v1170_v57 = vsub.f32 %v2393_v45, %v2279_v21 }
 0x12c   : > { %v534_v7 = vpop.permute.xlu1 %533  ;;  %v556_v8 = vpop.permute.xlu0 %555 }
 0x12d   : > { %v539_v2 = vadd.f32 %v534_v7, %v517_v63  ;;  %v1150_v63 = vand.u32 2147483647, %v1148_v23 }
 0x12e   : > { %1011 = vrot.lane.b32.xlu1 %v1006_v13, %s1874_s10  ;;  %1053 = vrot.lane.b32.xlu0 %v1049_v12, %s1876_s12 }
 0x12f   : > { %v561_v20 = vadd.f32 %v556_v8, %v539_v2 }
 0x130   : > { %v536_v5 = vpop.permute.xlu1 %535  ;;  %v558_v11 = vpop.permute.xlu0 %557 }
 0x131   : > { %v573_v31 = vadd.f32 %v571_v29, %v561_v20  ;;  %v540_v28 = vadd.f32 %v536_v5, %v518_v19  ;;  %v1172_v29 = vand.u32 2147483647, %v1170_v57 }
 0x132   : > { %1033 = vrot.lane.b32.xlu1 %v1028_v26, %s1875_s11  ;;  %1087 = vrot.lane.b32.xlu0 %v1083_v15, %s1870_s6 }
 0x133   : > { %v562_v61 = vadd.f32 %v558_v11, %v540_v28 }
 0x134   : > { %v1189_v36 = vpop.permute.xlu1 %1188  ;;  %v590_v16 = vpop.permute.xlu0 %589 }
 0x135   : > { %v574_v24 = vadd.f32 %v572_v43, %v562_v61  ;;  %v1191_v50 = vsub.f32 %v2377_v25, %v1189_v36  ;;  %v595_v35 = vadd.f32 %v590_v16, %v573_v31  ;;  %v1192_v18 = vsub.f32 %v2393_v45, %v1189_v36  ;;  %v2433_v61 = vld [vmem:[%s2075_s5 + $0xe] sm:$0x1] }
 0x136   : > { %1055 = vrot.lane.b32.xlu1 %v1050_v30, %s1876_s12  ;;  %1109 = vrot.lane.b32.xlu0 %v1105_v14, %s1872_s8 }
 0x137   : > { %v1193_v40 = vand.u32 2147483647, %v1191_v50  ;;  %v1194_v27 = vand.u32 2147483647, %v1192_v18 }
 0x138   : > { %v1211_v58 = vpop.permute.xlu1 %1210  ;;  %v612_v41 = vpop.permute.xlu0 %611 }
 0x139   : > { %v617_v48 = vadd.f32 %v612_v41, %v595_v35  ;;  %v1213_v17 = vsub.f32 %v2377_v25, %v1211_v58  ;;  %v1214_v5 = vsub.f32 %v2393_v45, %v1211_v58 }
 0x13a   : > { %1089 = vrot.lane.b32.xlu1 %v1084_v37, %s1870_s6  ;;  %1131 = vrot.lane.b32.xlu0 %v1127_v62, %s1871_s7  ;;  %v734_v62 = vrot.slane %v2010_v32, %v2269_v54 }
 0x13b   : > { %v1215_v19 = vand.u32 2147483647, %v1213_v17  ;;  %v1216_v30 = vand.u32 2147483647, %v1214_v5 }
 0x13c   : > { %v592_v47 = vpop.permute.xlu1 %591  ;;  %v614_v9 = vpop.permute.xlu0 %613 }
 0x13d   : > { %v596_v56 = vadd.f32 %v592_v47, %v574_v24 }
 0x13e   : > { %1111 = vrot.lane.b32.xlu1 %v1106_v4, %s1872_s8  ;;  %1153 = vrot.lane.b32.xlu0 %v1149_v55, %s1873_s9 }
 0x13f   : > { %v618_v8 = vadd.f32 %v614_v9, %v596_v56  ;;  %v735_v9 = vsub.f32 %v2241_v51, %v734_v62 }
 0x140   : > { %v1245_v53 = vpop.permute.xlu1 %1244  ;;  %v1267_v10 = vpop.permute.xlu0 %1266 }
 0x141   : > { %v1247_v21 = vsub.f32 %v2422_v52, %v1245_v53  ;;  %v1269_v31 = vsub.f32 %v2422_v52, %v1267_v10  ;;  %v1248_v42 = vsub.f32 %v2433_v61, %v1245_v53  ;;  %v1270_v58 = vsub.f32 %v2433_v61, %v1267_v10 }
 0x142   : > { %1133 = vrot.lane.b32.xlu1 %v1128_v39, %s1871_s7  ;;  %1175 = vrot.lane.b32.xlu0 %v1171_v49, %s1874_s10  ;;  %v737_v35 = vand.u32 2147483647, %v735_v9 }
 0x143   : > { %v1249_v11 = vand.u32 2147483647, %v1247_v21  ;;  %v1271_v14 = vand.u32 2147483647, %v1269_v31  ;;  %v1250_v22 = vand.u32 2147483647, %v1248_v42 }
 0x144   : > { %v634_v12 = vpop.permute.xlu1 %633  ;;  %v656_v13 = vpop.permute.xlu0 %655  ;;  %v1272_v39 = vand.u32 2147483647, %v1270_v58  ;;  %v2462_v21 = vld [vmem:[%s2075_s5 + $0x7] sm:$0xff] }
 0x145   : > { %v639_v7 = vadd.f32 %v634_v12, %v617_v48  ;;  %v736_v48 = vsub.f32 %v2231_v44, %v734_v62 }
 0x146   : > { %1155 = vrot.lane.b32.xlu1 %v1150_v63, %s1873_s9  ;;  %1197 = vrot.lane.b32.xlu0 %v1193_v40, %s1875_s11 }
 0x147   : > { %v661_v2 = vadd.f32 %v656_v13, %v639_v7  ;;  %v738_v7 = vand.u32 2147483647, %v736_v48 }
 0x148   : > { %v636_v20 = vpop.permute.xlu1 %635  ;;  %v658_v26 = vpop.permute.xlu0 %657 }
 0x149   : > { %v640_v33 = vadd.f32 %v636_v20, %v618_v8 }
 0x14a   : > { %1177 = vrot.lane.b32.xlu1 %v1172_v29, %s1874_s10  ;;  %1219 = vrot.lane.b32.xlu0 %v1215_v19, %s1876_s12 }
 0x14b   : > { %v662_v15 = vadd.f32 %v658_v26, %v640_v33 }
 0x14c   : > { %v1289_v28 = vpop.permute.xlu1 %1288  ;;  %v1311_v43 = vpop.permute.xlu0 %1310 }
 0x14d   : > { %v1291_v34 = vsub.f32 %v2422_v52, %v1289_v28  ;;  %v1313_v37 = vsub.f32 %v2422_v52, %v1311_v43  ;;  %v1292_v23 = vsub.f32 %v2433_v61, %v1289_v28  ;;  %v1314_v51 = vsub.f32 %v2433_v61, %v1311_v43  ;;  %v2469_v28 = vld [vmem:[%s2075_s5 + $0xf] sm:$0x1] }
 0x14e   : > { %1199 = vrot.lane.b32.xlu1 %v1194_v27, %s1875_s11  ;;  %1253 = vrot.lane.b32.xlu0 %v1249_v11, %s1870_s6 }
 0x14f   : > { %v1293_v41 = vand.u32 2147483647, %v1291_v34  ;;  %v1315_v46 = vand.u32 2147483647, %v1313_v37  ;;  %v1294_v56 = vand.u32 2147483647, %v1292_v23 }
 0x150   : > { %v678_v36 = vpop.permute.xlu1 %677  ;;  %v700_v16 = vpop.permute.xlu0 %699  ;;  %v1316_v8 = vand.u32 2147483647, %v1314_v51  ;;  %v1559_v51 = vld [vmem:[%s2556_s2] sm:$0xff] }
 0x151   : > { %v683_v24 = vadd.f32 %v678_v36, %v661_v2 }
 0x152   : > { %1221 = vrot.lane.b32.xlu1 %v1216_v30, %s1876_s12  ;;  %1275 = vrot.lane.b32.xlu0 %v1271_v14, %s1872_s8 }
 0x153   : > { %v705_v3 = vadd.f32 %v700_v16, %v683_v24 }
 0x154   : > { %v680_v4 = vpop.permute.xlu1 %679  ;;  %v702_v38 = vpop.permute.xlu0 %701 }
 0x155   : > { %v684_v55 = vadd.f32 %v680_v4, %v662_v15 }
 0x156   : > { %1255 = vrot.lane.b32.xlu1 %v1250_v22, %s1870_s6  ;;  %1297 = vrot.lane.b32.xlu0 %v1293_v41, %s1871_s7 }
 0x157   : > { %v706_v47 = vadd.f32 %v702_v38, %v684_v55 }
 0x158   : > { %v1333_v49 = vpop.permute.xlu1 %1332  ;;  %v1355_v32 = vpop.permute.xlu0 %1354 }
 0x159   : > { %v1335_v50 = vsub.f32 %v2422_v52, %v1333_v49  ;;  %v1357_v53 = vsub.f32 %v2422_v52, %v1355_v32  ;;  %v1336_v2 = vsub.f32 %v2433_v61, %v1333_v49  ;;  %v1358_v33 = vsub.f32 %v2433_v61, %v1355_v32 }
 0x15a   : > { %1277 = vrot.lane.b32.xlu1 %v1272_v39, %s1872_s8  ;;  %1319 = vrot.lane.b32.xlu0 %v1315_v46, %s1873_s9 }
 0x15b   : > { %v1337_v10 = vand.u32 2147483647, %v1335_v50  ;;  %v1359_v17 = vand.u32 2147483647, %v1357_v53  ;;  %v1338_v26 = vand.u32 2147483647, %v1336_v2 }
 0x15c   : > { %v722_v63 = vpop.permute.xlu1 %721  ;;  %v1377_v57 = vpop.permute.xlu0 %1376  ;;  %v1360_v30 = vand.u32 2147483647, %v1358_v33 }
 0x15d   : > { %v727_v40 = vadd.f32 %v722_v63, %v705_v3  ;;  %v1379_v12 = vsub.f32 %v2422_v52, %v1377_v57  ;;  %v1380_v42 = vsub.f32 %v2433_v61, %v1377_v57  ;;  %v1560_v63 = vld [vmem:[%s2556_s2 + $0x8] sm:$0xff] }
 0x15e   : > { %1299 = vrot.lane.b32.xlu1 %v1294_v56, %s1871_s7  ;;  %1341 = vrot.lane.b32.xlu0 %v1337_v10, %s1874_s10 }
 0x15f   : > { %v739_v13 = vadd.f32 %v737_v35, %v727_v40  ;;  %v1381_v19 = vand.u32 2147483647, %v1379_v12  ;;  %v1382_v37 = vand.u32 2147483647, %v1380_v42  ;;  %v1820_v40 = vpack.c.bf16 %v1560_v63, %v1559_v51 }
 0x160   : > { %v724_v44 = vpop.permute.xlu1 %723  ;;  %v758_v29 = vpop.permute.xlu0 %757 }
 0x161   : > { %v728_v18 = vadd.f32 %v724_v44, %v706_v47  ;;  %1821 = vmatprep.subr.bf16.mxu0 %v1820_v40 }
 0x162   : > { %1321 = vrot.lane.b32.xlu1 %v1316_v8, %s1873_s9  ;;  %1363 = vrot.lane.b32.xlu0 %v1359_v17, %s1875_s11 }
 0x163   : > { %v740_v20 = vadd.f32 %v738_v7, %v728_v18  ;;  %1823 = vmatpush3.bf16.msra.mxu0 %v1820_v40  ;;  %v1562_v18 = vld [vmem:[%s2556_s2 + $0x18] sm:$0xff] }
 0x164   : > { %v756_v15 = vpop.permute.xlu1 %755  ;;  %v1411_v27 = vpop.permute.xlu0 %1410 }
 0x165   : > { %v762_v5 = vadd.f32 %v758_v29, %v740_v20  ;;  %v761_v11 = vadd.f32 %v756_v15, %v739_v13  ;;  %v1413_v31 = vsub.f32 %v2462_v21, %v1411_v27  ;;  %v1414_v16 = vsub.f32 %v2469_v28, %v1411_v27  ;;  %v1561_v29 = vld [vmem:[%s2556_s2 + $0x10] sm:$0xff] }
 0x166   : > { %1343 = vrot.lane.b32.xlu1 %v1338_v26, %s1874_s10  ;;  %1385 = vrot.lane.b32.xlu0 %v1381_v19, %s1876_s12  ;;  %v1824_v26 = vpack.c.bf16 %v1562_v18, %v1561_v29 }
 0x167   : > { %v1415_v43 = vand.u32 2147483647, %v1413_v31  ;;  %v1416_v58 = vand.u32 2147483647, %v1414_v16 }
 0x168   : > { %v778_v14 = vpop.permute.xlu1 %777  ;;  %v800_v34 = vpop.permute.xlu0 %799  ;;  %1825 = vmatprep.subr.bf16.mxu0 %v1824_v26 }
 0x169   : > { %v783_v36 = vadd.f32 %v778_v14, %v761_v11  ;;  %1827 = vmatpush3.bf16.msra.mxu0 %v1824_v26 }
 0x16a   : > { %1365 = vrot.lane.b32.xlu1 %v1360_v30, %s1875_s11  ;;  %1419 = vrot.lane.b32.xlu0 %v1415_v43, %s1870_s6  ;;  %v1563_v30 = vld [vmem:[%s2556_s2 + $0x20] sm:$0xf] }
 0x16b   : > { %v805_v24 = vadd.f32 %v800_v34, %v783_v36  ;;  %1815 = vmatprep.subr.msk.mxu0 %vm1571_vm0, %v1563_v30 }
 0x16c   : > { %v780_v3 = vpop.permute.xlu1 %779  ;;  %v802_v62 = vpop.permute.xlu0 %801 }
 0x16d   : > { %v784_v22 = vadd.f32 %v780_v3, %v762_v5  ;;  %1816 = vmatpush3.msk.msra.mxu0 %vm1571_vm0, %v1563_v30 }
 0x16e   : > { %1387 = vrot.lane.b32.xlu1 %v1382_v37, %s1876_s12 }
 0x16f   : > { %v806_v41 = vadd.f32 %v802_v62, %v784_v22 }
 0x170   : > { %v1433_v4 = vpop.permute.xlu1 %1432  ;;  %v1455_v38 = vpop.permute.xlu0 %1454 }
 0x171   : > { %v1435_v55 = vsub.f32 %v2462_v21, %v1433_v4  ;;  %v1436_v46 = vsub.f32 %v2469_v28, %v1433_v4  ;;  %v1457_v47 = vsub.f32 %v2462_v21, %v1455_v38  ;;  %v1458_v9 = vsub.f32 %v2469_v28, %v1455_v38 }
 0x172   : > { %1421 = vrot.lane.b32.xlu1 %v1416_v58, %s1870_s6  ;;  %v1852_v58 = vld [vmem:[%s1925_s20 + $0x20] sm:$0xff] }
 0x173   : > { %v1437_v39 = vand.u32 2147483647, %v1435_v55  ;;  %v1438_v23 = vand.u32 2147483647, %v1436_v46  ;;  %v1459_v50 = vand.u32 2147483647, %v1457_v47 }
 0x174   : > { %v822_v49 = vpop.permute.xlu1 %821  ;;  %v844_v32 = vpop.permute.xlu0 %843  ;;  %v1460_v10 = vand.u32 2147483647, %v1458_v9 }
 0x175   : > { %v827_v53 = vadd.f32 %v822_v49, %v805_v24  ;;  %1441 = vrot.lane.b32.xlu0 %v1437_v39, %s1872_s8 }
 0x176   : > { %1443 = vrot.lane.b32.xlu1 %v1438_v23, %s1872_s8 }
 0x177   : > { %v849_v35 = vadd.f32 %v844_v32, %v827_v53 }
 0x178   : > { %v824_v48 = vpop.permute.xlu1 %823  ;;  %v846_v56 = vpop.permute.xlu0 %845 }
 0x179   : > { %v828_v57 = vadd.f32 %v824_v48, %v806_v41  ;;  %1463 = vrot.lane.b32.xlu0 %v1459_v50, %s1871_s7  ;;  %v900_v41 = vrot.slane %v1852_v58, %v2269_v54 }
 0x17a   : > { %1465 = vrot.lane.b32.xlu1 %v1460_v10, %s1871_s7 }
 0x17b   : > { %v850_v17 = vadd.f32 %v846_v56, %v828_v57  ;;  %v901_v47 = vsub.f32 %v2322_v6, %v900_v41 }
 0x17c   : > { %v1477_v12 = vpop.permute.xlu1 %1476  ;;  %v1499_v13 = vpop.permute.xlu0 %1498 }
 0x17d   : > { %v1479_v7 = vsub.f32 %v2462_v21, %v1477_v12  ;;  %v1480_v8 = vsub.f32 %v2469_v28, %v1477_v12  ;;  %v1501_v2 = vsub.f32 %v2462_v21, %v1499_v13  ;;  %v1502_v44 = vsub.f32 %v2469_v28, %v1499_v13 }
 0x17e   : > { %v903_v49 = vand.u32 2147483647, %v901_v47 }
 0x17f   : > { %v1481_v19 = vand.u32 2147483647, %v1479_v7  ;;  %v1482_v20 = vand.u32 2147483647, %v1480_v8  ;;  %v1503_v27 = vand.u32 2147483647, %v1501_v2 }
 0x180   : > { %v866_v33 = vpop.permute.xlu1 %865  ;;  %v888_v15 = vpop.permute.xlu0 %887  ;;  %v1504_v5 = vand.u32 2147483647, %v1502_v44  ;;  %v1853_v7 = vld [vmem:[%s1925_s20 + $0x28] sm:$0xff] }
 0x181   : > { %v871_v11 = vadd.f32 %v866_v33, %v849_v35  ;;  %1487 = vrot.lane.b32.xlu1 %v1482_v20, %s1873_s9  ;;  %1485 = vrot.lane.b32.xlu0 %v1481_v19, %s1873_s9  ;;  %v902_v35 = vsub.f32 %v2337_v60, %v900_v41  ;;  %v1066_v8 = vrot.slane %v1853_v7, %v2269_v54 }
 0x183   : > { %v893_v23 = vadd.f32 %v888_v15, %v871_v11  ;;  %v904_v40 = vand.u32 2147483647, %v902_v35  ;;  %v1067_v60 = vsub.f32 %v2377_v25, %v1066_v8 }
 0x184   : > { %v868_v31 = vpop.permute.xlu1 %867  ;;  %v890_v43 = vpop.permute.xlu0 %889 }
 0x185   : > { %1509 = vrot.lane.b32.xlu1 %v1504_v5, %s1874_s10  ;;  %1507 = vrot.lane.b32.xlu0 %v1503_v27, %s1874_s10  ;;  %v872_v53 = vadd.f32 %v868_v31, %v850_v17  ;;  %v905_v10 = vadd.f32 %v903_v49, %v893_v23  ;;  %v1069_v11 = vand.u32 2147483647, %v1067_v60 }
 0x187   : > { %v894_v63 = vadd.f32 %v890_v43, %v872_v53 }
 0x188   : > { %v1521_v42 = vpop.permute.xlu1 %1520  ;;  %v922_v14 = vpop.permute.xlu0 %921 }
 0x189   : > { %v1523_v34 = vsub.f32 %v2462_v21, %v1521_v42  ;;  %v1524_v36 = vsub.f32 %v2469_v28, %v1521_v42  ;;  %v927_v51 = vadd.f32 %v922_v14, %v905_v10  ;;  %v906_v2 = vadd.f32 %v904_v40, %v894_v63 }
 0x18b   : > { %v1525_v16 = vand.u32 2147483647, %v1523_v34  ;;  %v1526_v24 = vand.u32 2147483647, %v1524_v36  ;;  %v1068_v34 = vsub.f32 %v2393_v45, %v1066_v8 }
 0x18c   : > { %v1543_v37 = vpop.permute.xlu1 %1542  ;;  %v944_v3 = vpop.permute.xlu0 %943 }
 0x18d   : > { %v1545_v62 = vsub.f32 %v2462_v21, %v1543_v37  ;;  %v1546_v22 = vsub.f32 %v2469_v28, %v1543_v37  ;;  %1531 = vrot.lane.b32.xlu1 %v1526_v24, %s1875_s11  ;;  %1529 = vrot.lane.b32.xlu0 %v1525_v16, %s1875_s11  ;;  %v949_v57 = vadd.f32 %v944_v3, %v927_v51  ;;  %v1070_v3 = vand.u32 2147483647, %v1068_v34 }
 0x18f   : > { %v1547_v4 = vand.u32 2147483647, %v1545_v62  ;;  %v1548_v38 = vand.u32 2147483647, %v1546_v22  ;;  %v1854_v22 = vld [vmem:[%s1925_s20 + $0x30] sm:$0xff] }
 0x190   : > { %v924_v55 = vpop.permute.xlu1 %923  ;;  %v966_v46 = vpop.permute.xlu0 %965  ;;  %v1232_v58 = vrot.slane %v1854_v22, %v2269_v54 }
 0x191   : > { %1553 = vrot.lane.b32.xlu1 %v1548_v38, %s1876_s12  ;;  %1551 = vrot.lane.b32.xlu0 %v1547_v4, %s1876_s12  ;;  %v971_v6 = vadd.f32 %v966_v46, %v949_v57  ;;  %v928_v17 = vadd.f32 %v924_v55, %v906_v2 }
 0x192   : > { %v1233_v47 = vsub.f32 %v2422_v52, %v1232_v58  ;;  %v1234_v63 = vsub.f32 %v2433_v61, %v1232_v58 }
 0x194   : > { %v946_v9 = vpop.permute.xlu1 %945  ;;  %v988_v39 = vpop.permute.xlu0 %987  ;;  %v1236_v52 = vand.u32 2147483647, %v1234_v63 }
 0x195   : > { %v993_v44 = vadd.f32 %v988_v39, %v971_v6  ;;  %v950_v20 = vadd.f32 %v946_v9, %v928_v17 }
 0x198   : > { %v968_v32 = vpop.permute.xlu1 %967  ;;  %v1010_v50 = vpop.permute.xlu0 %1009 }
 0x199   : > { %v1015_v19 = vadd.f32 %v1010_v50, %v993_v44  ;;  %v972_v27 = vadd.f32 %v968_v32, %v950_v20  ;;  %v1235_v50 = vand.u32 2147483647, %v1233_v47  ;;  %v1398_v20 = vrot.slane %v2250_v59, %v2269_v54 }
 0x19b   : > { %v1400_v59 = vsub.f32 %v2469_v28, %v1398_v20 }
 0x19c   : > { %v990_v48 = vpop.permute.xlu1 %989  ;;  %v1032_v56 = vpop.permute.xlu0 %1031 }
 0x19d   : > { %v1037_v26 = vadd.f32 %v1032_v56, %v1015_v19  ;;  %v994_v31 = vadd.f32 %v990_v48, %v972_v27  ;;  %v1399_v27 = vsub.f32 %v2462_v21, %v1398_v20  ;;  %v1402_v22 = vand.u32 2147483647, %v1400_v59 }
 0x19e   : > { %v1669_v20 = vadd.s32 8, %v1913_v1 }
 0x1a0   : > { %v1012_v12 = vpop.permute.xlu1 %1011  ;;  %v1054_v13 = vpop.permute.xlu0 %1053 }
 0x1a1   : > { %v1059_v5 = vadd.f32 %v1054_v13, %v1037_v26  ;;  %v1016_v42 = vadd.f32 %v1012_v12, %v994_v31 }
 0x1a3   : > { %v1071_v14 = vadd.f32 %v1069_v11, %v1059_v5 }
 0x1a4   : > { %v1034_v29 = vpop.permute.xlu1 %1033  ;;  %v1088_v18 = vpop.permute.xlu0 %1087 }
 0x1a5   : > { %v1038_v36 = vadd.f32 %v1034_v29, %v1016_v42  ;;  %v1093_v37 = vadd.f32 %v1088_v18, %v1071_v14  ;;  %v1401_v14 = vand.u32 2147483647, %v1399_v27 }
 0x1a8   : > { %v1056_v33 = vpop.permute.xlu1 %1055  ;;  %v1110_v15 = vpop.permute.xlu0 %1109 }
 0x1a9   : > { %v1060_v25 = vadd.f32 %v1056_v33, %v1038_v36  ;;  %v1115_v62 = vadd.f32 %v1110_v15, %v1093_v37 }
 0x1ab   : > { %v1072_v38 = vadd.f32 %v1070_v3, %v1060_v25 }
 0x1ac   : > { %v1090_v43 = vpop.permute.xlu1 %1089  ;;  %v1132_v30 = vpop.permute.xlu0 %1131 }
 0x1ad   : > { %v1137_v55 = vadd.f32 %v1132_v30, %v1115_v62  ;;  %v1094_v45 = vadd.f32 %v1090_v43, %v1072_v38 }
 0x1b0   : > { %v1112_v16 = vpop.permute.xlu1 %1111  ;;  %v1154_v24 = vpop.permute.xlu0 %1153 }
 0x1b1   : > { %v1159_v46 = vadd.f32 %v1154_v24, %v1137_v55  ;;  %v1116_v49 = vadd.f32 %v1112_v16, %v1094_v45 }
 0x1b4   : > { %v1134_v41 = vpop.permute.xlu1 %1133  ;;  %v1176_v4 = vpop.permute.xlu0 %1175 }
 0x1b5   : > { %v1181_v23 = vadd.f32 %v1176_v4, %v1159_v46  ;;  %v1138_v35 = vadd.f32 %v1134_v41, %v1116_v49 }
 0x1b8   : > { %v1156_v9 = vpop.permute.xlu1 %1155  ;;  %v1198_v39 = vpop.permute.xlu0 %1197 }
 0x1b9   : > { %v1203_v32 = vadd.f32 %v1198_v39, %v1181_v23  ;;  %v1160_v56 = vadd.f32 %v1156_v9, %v1138_v35 }
 0x1bc   : > { %v1178_v53 = vpop.permute.xlu1 %1177  ;;  %v1220_v10 = vpop.permute.xlu0 %1219 }
 0x1bd   : > { %v1225_v48 = vadd.f32 %v1220_v10, %v1203_v32  ;;  %v1182_v12 = vadd.f32 %v1178_v53, %v1160_v56 }
 0x1bf   : > { %v1237_v51 = vadd.f32 %v1235_v50, %v1225_v48 }
 0x1c0   : > { %v1200_v57 = vpop.permute.xlu1 %1199  ;;  %v1254_v40 = vpop.permute.xlu0 %1253 }
 0x1c1   : > { %v1204_v13 = vadd.f32 %v1200_v57, %v1182_v12  ;;  %v1259_v19 = vadd.f32 %v1254_v40, %v1237_v51 }
 0x1c4   : > { %v1222_v6 = vpop.permute.xlu1 %1221  ;;  %v1276_v7 = vpop.permute.xlu0 %1275 }
 0x1c5   : > { %v1226_v8 = vadd.f32 %v1222_v6, %v1204_v13  ;;  %v1281_v60 = vadd.f32 %v1276_v7, %v1259_v19 }
 0x1c7   : > { %v1238_v2 = vadd.f32 %v1236_v52, %v1226_v8 }
 0x1c8   : > { %v1256_v44 = vpop.permute.xlu1 %1255  ;;  %v1298_v29 = vpop.permute.xlu0 %1297 }
 0x1c9   : > { %v1303_v33 = vadd.f32 %v1298_v29, %v1281_v60  ;;  %v1260_v31 = vadd.f32 %v1256_v44, %v1238_v2 }
 0x1cc   : > { %v1278_v18 = vpop.permute.xlu1 %1277  ;;  %v1320_v17 = vpop.permute.xlu0 %1319 }
 0x1cd   : > { %v1325_v15 = vadd.f32 %v1320_v17, %v1303_v33  ;;  %v1282_v30 = vadd.f32 %v1278_v18, %v1260_v31  ;;  %v1671_v33 = vand.u32 127, %v233_v0 }
 0x1d0   : > { %v1300_v26 = vpop.permute.xlu1 %1299  ;;  %v1342_v61 = vpop.permute.xlu0 %1341 }
 0x1d1   : > { %v1347_v43 = vadd.f32 %v1342_v61, %v1325_v15  ;;  %v1304_v16 = vadd.f32 %v1300_v26, %v1282_v30  ;;  %v1673_v15 = vmul.u32 9, %v1669_v20 }
 0x1d3   : > { %v1675_v31 = vadd.s32 %v1673_v15, %v1671_v33 }
 0x1d4   : > { %v1322_v5 = vpop.permute.xlu1 %1321  ;;  %v1364_v11 = vpop.permute.xlu0 %1363 }
 0x1d5   : > { %v1369_v42 = vadd.f32 %v1364_v11, %v1347_v43  ;;  %v1326_v37 = vadd.f32 %v1322_v5, %v1304_v16  ;;  %v1672_v5 = vmul.u32 9, %v1913_v1 }
 0x1d7   : > { %v1674_v30 = vadd.s32 %v1672_v5, %v1671_v33 }
 0x1d8   : > { %v1344_v34 = vpop.permute.xlu1 %1343  ;;  %v1386_v36 = vpop.permute.xlu0 %1385 }
 0x1d9   : > { %v1391_v24 = vadd.f32 %v1386_v36, %v1369_v42  ;;  %v1348_v3 = vadd.f32 %v1344_v34, %v1326_v37  ;;  %v1676_v36 = vcvt.s32.f32 %v1674_v30 }
 0x1db   : > { %v1403_v25 = vadd.f32 %v1401_v14, %v1391_v24  ;;  %v1677_v14 = vcvt.s32.f32 %v1675_v31 }
 0x1dc   : > { %v1366_v54 = vpop.permute.xlu1 %1365  ;;  %v1420_v38 = vpop.permute.xlu0 %1419 }
 0x1dd   : > { %v1370_v62 = vadd.f32 %v1366_v54, %v1348_v3  ;;  %v1425_v23 = vadd.f32 %v1420_v38, %v1403_v25 }
 0x1e0   : > { %v1388_v21 = vpop.permute.xlu1 %1387 }
 0x1e1   : > { %v1392_v58 = vadd.f32 %v1388_v21, %v1370_v62 }
 0x1e3   : > { %v1404_v41 = vadd.f32 %v1402_v22, %v1392_v58 }
 0x1e4   : > { %v1422_v4 = vpop.permute.xlu1 %1421 }
 0x1e5   : > { %v1426_v49 = vadd.f32 %v1422_v4, %v1404_v41 }
 0x1e7   : > { %v1442_v55 = vpop.permute.xlu0 %1441 }
 0x1e8   : > { %v1444_v46 = vpop.permute.xlu1 %1443  ;;  %v1447_v32 = vadd.f32 %v1442_v55, %v1425_v23 }
 0x1e9   : > { %v1448_v50 = vadd.f32 %v1444_v46, %v1426_v49 }
 0x1eb   : > { %v1464_v47 = vpop.permute.xlu0 %1463 }
 0x1ec   : > { %v1466_v9 = vpop.permute.xlu1 %1465  ;;  %v1469_v10 = vadd.f32 %v1464_v47, %v1447_v32 }
 0x1ed   : > { %v1470_v35 = vadd.f32 %v1466_v9, %v1448_v50 }
 0x1f3   : > { %v1488_v39 = vpop.permute.xlu1 %1487  ;;  %v1486_v45 = vpop.permute.xlu0 %1485 }
 0x1f4   : > { %v1492_v48 = vadd.f32 %v1488_v39, %v1470_v35  ;;  %v1491_v56 = vadd.f32 %v1486_v45, %v1469_v10 }
 0x1f7   : > { %v1510_v28 = vpop.permute.xlu1 %1509  ;;  %v1508_v53 = vpop.permute.xlu0 %1507 }
 0x1f8   : > { %v1514_v57 = vadd.f32 %v1510_v28, %v1492_v48  ;;  %v1513_v40 = vadd.f32 %v1508_v53, %v1491_v56 }
 0x1ff   : > { %v1532_v51 = vpop.permute.xlu1 %1531  ;;  %v1530_v63 = vpop.permute.xlu0 %1529 }
 0x200   : > { %v1536_v12 = vadd.f32 %v1532_v51, %v1514_v57  ;;  %v1535_v13 = vadd.f32 %v1530_v63, %v1513_v40 }
 0x203   : > { %v1554_v52 = vpop.permute.xlu1 %1553  ;;  %v1552_v6 = vpop.permute.xlu0 %1551 }
 0x204   : > { %v1558_v7 = vadd.f32 %v1554_v52, %v1536_v12  ;;  %v1557_v8 = vadd.f32 %v1552_v6, %v1535_v13 }
 0x206   : > { %1817 = vmatprep.mubr.msk.f32.mxu0 %vm1564_vm1, %v1557_v8 }
 0x207   : > { %1818 = vmatmul.mubr.msk.f32.vlgmr.msra.gmra.mrb[0].mxu0 %vm1564_vm1, %v1558_v7 }
 0x2da   : > { %v1819_v2 = vpop.f32.mrb[0].mxu0 }
 0x2db   : > { %v1641_v44 = vpop.f32.mrb[1].mxu0  ;;  %v1655_v29 = vsel %vm1654_vm2, %v1819_v2, inf }
 0x2dc   : > { %v1651_v18 = vsel %vm1650_vm3, %v1641_v44, inf  ;;  %1656 = vmin.xlane.f32.xlu0 %v1655_v29 }
 0x2dd   : > { %1652 = vmin.xlane.f32.xlu1 %v1651_v18 }
 0x369   : > { %v1657_v17 = vpop.xlane.xlu0 %1656 }
 0x36a   : > { %v1659_v19 = vsel %vm1658_vm4, %v1657_v17, inf  ;;  %v1653_v60 = vpop.xlane.xlu1 %1652 }
 0x36b   : > { %v1660_v26 = vmin.f32 %v1653_v60, %v1659_v19 }
 0x36d   : > { %v1661_v61 = vrot.slane %v1660_v26, 4 }
 0x36f   : > { %v1662_v27 = vmin.f32 %v1660_v26, %v1661_v61 }
 0x371   : > { %v1663_v11 = vrot.slane %v1662_v27, 2 }
 0x373   : > { %v1664_v43 = vmin.f32 %v1662_v27, %v1663_v11 }
 0x375   : > { %v1665_v42 = vrot.slane %v1664_v43, 1 }
 0x377   : > { %v1666_v34 = vmin.f32 %v1664_v43, %v1665_v42 }
 0x379   : > { %1699 = vst.msk [vmem:[%s222_s27] sm:$0x1] %vm1697_vm5, %v1666_v34  ;;  %vm1679_vm6 = vcmp.eq.f32.partialorder %v1819_v2, %v1666_v34  ;;  %vm1678_vm7 = vcmp.eq.f32.partialorder %v1641_v44, %v1666_v34 }
 0x37a   : > { %v1681_v0 = vsel %vm1679_vm6, %v1677_v14, 81.0  ;;  %v1680_v16 = vsel %vm1678_vm7, %v1676_v36, 81.0 }
 0x37b   : > { %v1685_v1 = vsel %vm1654_vm2, %v1681_v0, inf  ;;  %v1682_v24 = vsel %vm1650_vm3, %v1680_v16, inf }
 0x37c   : > { %1686 = vmin.xlane.f32.xlu0 %v1685_v1 }
 0x380   : > { %1683 = vmin.xlane.f32.xlu0 %v1682_v24 }
 0x409   : > { %v1687_v37 = vpop.xlane.xlu0 %1686 }
 0x40a   : > { %v1688_v25 = vsel %vm1658_vm4, %v1687_v37, inf }
 0x40d   : > { %v1684_v59 = vpop.xlane.xlu0 %1683 }
 0x40e   : > { %v1689_v54 = vmin.f32 %v1684_v59, %v1688_v25 }
 0x410   : > { %v1690_v3 = vrot.slane %v1689_v54, 4 }
 0x412   : > { %v1691_v62 = vmin.f32 %v1689_v54, %v1690_v3 }
 0x414   : > { %v1692_v22 = vrot.slane %v1691_v62, 2 }
 0x416   : > { %v1693_v21 = vmin.f32 %v1691_v62, %v1692_v22 }
 0x418   : > { %v1694_v58 = vrot.slane %v1693_v21, 1 }
 0x41a   : > { %v1695_v41 = vmin.f32 %v1693_v21, %v1694_v58 }
 0x41c   : > { %v1828_v4 = vtrunc.f32 %v1695_v41 }
 0x41e   : > { %v1829_v38 = vcvt.f32.s32 %v1828_v4 }
 0x420   : > { %1698 = vst.msk [vmem:[%s219_s30] sm:$0x1] %vm1697_vm5, %v1829_v38 }
 0x421 PF: > { %s15_s15 = sadd.s32 1, %s1861_s15  }
 0x422   : > { %p12_p4 = scmp.ge.s32.totalorder %s15_s15, 4  }
 0x424   :  { %14 = sbr.rel (!%p12_p4) target bundleno = 1 (0x1), region = 77 }

</bundles_post_ra>
